<compile_context>
chip_gen: v7x
topology: tpu7x:2x2x1
jax: 0.10.0
libtpu: 0.0.40
codegen_flags: <defaults>
</compile_context>

<pallas_src>
import jax
import jax.numpy as jnp
from jax import lax
from jax.experimental import pallas as pl
from jax.experimental.pallas import tpu as pltpu

NEG_SLOPE = 0.1
BN_EPS = 1e-5


def _round_up(a, b):
    return (a + b - 1) // b * b


# ----------------------------- Pallas kernel ------------------------------- #
def _make_conv_lrelu_stats_kernel(kh, kw, stride, ho, wo):
    """Fused conv (in-kernel im2col) + LeakyReLU + per-channel sum/sumsq."""
    hw = ho * wo

    def kernel(x_ref, w_ref, y_ref, stats_ref):
        # x_ref:     (1, Hp, Wp, Cin)   zero-padded NHWC image (this batch elem)
        # w_ref:     (kh*kw, Cin, TN)   per-tap weight matrices (this Cout tile)
        # y_ref:     (1, Ho*Wo, TN)     LeakyReLU(conv) activations
        # stats_ref: (1, 2, TN)         row 0 = sum(y), row 1 = sum(y*y)
        cin = x_ref.shape[-1]
        tn = w_ref.shape[-1]
        acc = jnp.zeros((hw, tn), dtype=jnp.float32)
        # kh*kw shifted views of the halo tile, each feeding one MXU matmul,
        # accumulated in f32.  No patches array ever touches HBM.
        for di in range(kh):
            for dj in range(kw):
                if stride == 1:
                    xs = x_ref[0, pl.ds(di, ho), pl.ds(dj, wo), :]
                else:
                    xs = x_ref[0, pl.ds(di, ho, stride), pl.ds(dj, wo, stride), :]
                acc = acc + jnp.dot(xs.reshape(hw, cin), w_ref[di * kw + dj],
                                    preferred_element_type=jnp.float32)
        y = jnp.where(acc > 0, acc, NEG_SLOPE * acc)             # LeakyReLU(0.1)
        y_store = y.astype(y_ref.dtype)
        y_ref[0] = y_store
        # Stats on the value phase 2 actually reads back (consistent with the
        # stored/bf16-rounded activations).
        yf = y_store.astype(jnp.float32)
        s = jnp.sum(yf, axis=0, keepdims=True)                   # (1, TN)
        ss = jnp.sum(yf * yf, axis=0, keepdims=True)             # (1, TN)
        row = lax.broadcasted_iota(jnp.int32, (2, 1), 0)
        stats_ref[0] = jnp.where(row == 0, s, ss)                # (2, TN)

    return kernel


# ------------------------------- glue (JAX) -------------------------------- #
def convention_forward(x_nchw, conv_w, bn_gamma, bn_beta, *, stride, padding,
                       compute_dtype=jnp.bfloat16):
    """Matches Convention.forward with need_bn=True (training-mode batch stats)."""
    c_out, c_in, kh, kw = conv_w.shape
    n, _, h, w = x_nchw.shape
    ho = (h + 2 * padding - kh) // stride + 1
    wo = (w + 2 * padding - kw) // stride + 1
    hw = ho * wo
    hp, wp = h + 2 * padding, w + 2 * padding

    # One cheap XLA pass: NCHW -> NHWC + spatial zero pad (the im2col expansion
    # happens inside the kernel, from this single copy).
    x_nhwc = jnp.transpose(x_nchw, (0, 2, 3, 1))
    xp = jnp.pad(x_nhwc, ((0, 0), (padding, padding), (padding, padding),
                          (0, 0))).astype(compute_dtype)

    # Cout tiling: true channel width when small (no 128-padding), 256-wide
    # MXU-friendly tiles only when Cout is large.
    if c_out <= 256:
        tn, c_pad = c_out, c_out
    else:
        tn = 256
        c_pad = _round_up(c_out, tn)
    num_ct = c_pad // tn

    # (Cout, Cin, kh, kw) -> (kh*kw, Cin, Cout_pad): tap-major weight matrices.
    w_k = jnp.transpose(conv_w, (2, 3, 1, 0)).reshape(kh * kw, c_in, c_out)
    w_k = jnp.pad(w_k, ((0, 0), (0, 0), (0, c_pad - c_out))).astype(compute_dtype)

    itemsize = jnp.dtype(compute_dtype).itemsize
    cost = pl.CostEstimate(
        flops=2 * n * hw * kh * kw * c_in * c_pad,
        transcendentals=0,
        bytes_accessed=(xp.size * itemsize + n * w_k.size * itemsize
                        + n * hw * c_pad * itemsize + n * 2 * c_pad * 4))

    kernel = _make_conv_lrelu_stats_kernel(kh, kw, stride, ho, wo)

    # Grid (batch, cout-tile): both independent -> "parallel" (feeds both v7x
    # TensorCores for N >= 2).  The image block index does not change with the
    # cout-tile axis, so the image is not re-fetched across cout tiles.
    y_flat, stats = pl.pallas_call(
        kernel,
        out_shape=(jax.ShapeDtypeStruct((n, hw, c_pad), compute_dtype),
                   jax.ShapeDtypeStruct((n, 2, c_pad), jnp.float32)),
        grid=(n, num_ct),
        in_specs=[pl.BlockSpec((1, hp, wp, c_in), lambda b, j: (b, 0, 0, 0)),
                  pl.BlockSpec((kh * kw, c_in, tn), lambda b, j: (0, 0, j))],
        out_specs=(pl.BlockSpec((1, hw, tn), lambda b, j: (b, 0, j)),
                   pl.BlockSpec((1, 2, tn), lambda b, j: (b, 0, j))),
        compiler_params=pltpu.CompilerParams(
            dimension_semantics=("parallel", "parallel"),
            vmem_limit_bytes=32 * 1024 * 1024),
        cost_estimate=cost,
    )(xp, w_k)
    # TODO(synk): for very large images / Cin, add spatial halo tiling and a
    # Cin ("arbitrary") grid axis so the per-step working set stays bounded;
    # the constant-index weight block could also be single-buffered on v7x.

    # Fold training-mode BatchNorm (biased variance over N*Ho*Wo) into one
    # per-channel scale/shift.  Tiny (N x Cout) reduction -> plain XLA.
    m = float(n * hw)
    sums = jnp.sum(stats[:, 0, :c_out], axis=0)
    sumsq = jnp.sum(stats[:, 1, :c_out], axis=0)
    mean = sums / m
    var = jnp.maximum(sumsq / m - mean * mean, 0.0)
    inv_std = lax.rsqrt(var + BN_EPS)
    scale = bn_gamma.astype(jnp.float32) * inv_std
    shift = bn_beta.astype(jnp.float32) - mean * scale

    # Per-channel FMA fused by XLA with the single NHWC->NCHW transpose pass:
    # exactly one read of y and one write of the final output.
    y = y_flat[:, :, :c_out].astype(jnp.float32)
    out = y * scale[None, None, :] + shift[None, None, :]
    return out.transpose(0, 2, 1).reshape(n, c_out, ho, wo)


# --------------------------- pure-JAX reference ----------------------------- #
def convention_reference(x_nchw, conv_w, bn_gamma, bn_beta, *, stride, padding):
    y = lax.conv_general_dilated(
        x_nchw, conv_w, window_strides=(stride, stride),
        padding=[(padding, padding), (padding, padding)],
        dimension_numbers=("NCHW", "OIHW", "NCHW"))
    y = jnp.where(y > 0, y, NEG_SLOPE * y)
    mean = jnp.mean(y, axis=(0, 2, 3), keepdims=True)
    var = jnp.mean(jnp.square(y - mean), axis=(0, 2, 3), keepdims=True)
    y_hat = (y - mean) * lax.rsqrt(var + BN_EPS)
    return y_hat * bn_gamma.reshape(1, -1, 1, 1) + bn_beta.reshape(1, -1, 1, 1)


if __name__ == "__main__":
    # Convention(in_channels=4, out_channels=8, conv_size=3, conv_stride=1,
    #            padding=1, need_bn=True)
    N, C_IN, H, W = 2, 4, 16, 16
    C_OUT, KSIZE, STRIDE, PAD = 8, 3, 1, 1

    key = jax.random.PRNGKey(0)
    kx, kw_ = jax.random.split(key)
    x = jax.random.normal(kx, (N, C_IN, H, W), dtype=jnp.float32)

    fan_in = C_IN * KSIZE * KSIZE                      # kaiming-normal style init
    conv_w = jax.random.normal(kw_, (C_OUT, C_IN, KSIZE, KSIZE),
                               dtype=jnp.float32) * jnp.sqrt(2.0 / fan_in)
    bn_gamma = jnp.ones((C_OUT,), dtype=jnp.float32)   # BN default: weight=1
    bn_beta = jnp.zeros((C_OUT,), dtype=jnp.float32)   # BN default: bias=0

    ref = convention_reference(x, conv_w, bn_gamma, bn_beta,
                               stride=STRIDE, padding=PAD)

    # f32 MXU operands: tight tolerance.
    out_f32 = jax.block_until_ready(
        convention_forward(x, conv_w, bn_gamma, bn_beta,
                           stride=STRIDE, padding=PAD,
                           compute_dtype=jnp.float32))
    assert out_f32.shape == (N, C_OUT, H, W)
    assert jnp.allclose(out_f32, ref, atol=1e-4, rtol=1e-4)

    # bf16 MXU operands (preferred on v6e/v7x), f32 accumulation: looser tolerance.
    out_bf16 = jax.block_until_ready(
        convention_forward(x, conv_w, bn_gamma, bn_beta,
                           stride=STRIDE, padding=PAD,
                           compute_dtype=jnp.bfloat16))
    assert out_bf16.shape == (N, C_OUT, H, W)
    assert jnp.allclose(out_bf16, ref, atol=5e-2, rtol=5e-2)

    print("KERNEL_OK")
</pallas_src>

<mosaic_0001>
module attributes {stable_mosaic.version = 11 : i64} {
  func.func @kernel(%arg0: i32, %arg1: i32, %arg2: memref<1x18x18x4xf32, #tpu.memory_space<vmem>>, %arg3: memref<9x4x8xf32, #tpu.memory_space<vmem>>, %arg4: memref<1x256x8xf32, #tpu.memory_space<vmem>>, %arg5: memref<1x2x8xf32, #tpu.memory_space<vmem>>) attributes {dimension_semantics = [#tpu.dimension_semantics<parallel>, #tpu.dimension_semantics<parallel>], iteration_bounds = array<i64: 2, 1>, scalar_prefetch = 0 : i64, scratch_operands = 0 : i64, tpu.core_type = #tpu.core_type<tc>, window_params = [{transform_indices = @transform_0, window_bounds = array<i64: 1, 18, 18, 4>}, {transform_indices = @transform_1, window_bounds = array<i64: 9, 4, 8>}, {transform_indices = @transform_2, window_bounds = array<i64: 1, 256, 8>}, {transform_indices = @transform_3, window_bounds = array<i64: 1, 2, 8>}]} {
    %cst = arith.constant 0.000000e+00 : f32
    %0 = vector.broadcast %cst : f32 to vector<256x8xf32>
    %c0 = arith.constant 0 : index
    %c0_0 = arith.constant 0 : index
    %c0_1 = arith.constant 0 : index
    %c0_2 = arith.constant 0 : index
    %1 = vector.load %arg2[%c0, %c0_0, %c0_1, %c0_2] : memref<1x18x18x4xf32, #tpu.memory_space<vmem>>, vector<1x16x16x4xf32>
    %2 = vector.shape_cast %1 : vector<1x16x16x4xf32> to vector<16x16x4xf32>
    %3 = vector.shape_cast %2 : vector<16x16x4xf32> to vector<256x4xf32>
    %c0_3 = arith.constant 0 : index
    %c0_4 = arith.constant 0 : index
    %c0_5 = arith.constant 0 : index
    %4 = vector.load %arg3[%c0_3, %c0_4, %c0_5] : memref<9x4x8xf32, #tpu.memory_space<vmem>>, vector<1x4x8xf32>
    %5 = vector.shape_cast %4 : vector<1x4x8xf32> to vector<4x8xf32>
    %cst_6 = arith.constant dense<0.000000e+00> : vector<256x8xf32>
    %6 = tpu.matmul %3, %5, %cst_6 {dimension_numbers = #tpu.dot_dimension_numbers<[1], [0], [0], [1], [0, 0, 1, 1], [], []>} : vector<256x4xf32>, vector<4x8xf32>, vector<256x8xf32> -> vector<256x8xf32>
    %7 = arith.addf %0, %6 : vector<256x8xf32>
    %c0_7 = arith.constant 0 : index
    %c0_8 = arith.constant 0 : index
    %c1 = arith.constant 1 : index
    %c0_9 = arith.constant 0 : index
    %8 = vector.load %arg2[%c0_7, %c0_8, %c1, %c0_9] : memref<1x18x18x4xf32, #tpu.memory_space<vmem>>, vector<1x16x16x4xf32>
    %9 = vector.shape_cast %8 : vector<1x16x16x4xf32> to vector<16x16x4xf32>
    %10 = vector.shape_cast %9 : vector<16x16x4xf32> to vector<256x4xf32>
    %c1_10 = arith.constant 1 : index
    %c0_11 = arith.constant 0 : index
    %c0_12 = arith.constant 0 : index
    %11 = vector.load %arg3[%c1_10, %c0_11, %c0_12] : memref<9x4x8xf32, #tpu.memory_space<vmem>>, vector<1x4x8xf32>
    %12 = vector.shape_cast %11 : vector<1x4x8xf32> to vector<4x8xf32>
    %cst_13 = arith.constant dense<0.000000e+00> : vector<256x8xf32>
    %13 = tpu.matmul %10, %12, %cst_13 {dimension_numbers = #tpu.dot_dimension_numbers<[1], [0], [0], [1], [0, 0, 1, 1], [], []>} : vector<256x4xf32>, vector<4x8xf32>, vector<256x8xf32> -> vector<256x8xf32>
    %14 = arith.addf %7, %13 : vector<256x8xf32>
    %c0_14 = arith.constant 0 : index
    %c0_15 = arith.constant 0 : index
    %c2 = arith.constant 2 : index
    %c0_16 = arith.constant 0 : index
    %15 = vector.load %arg2[%c0_14, %c0_15, %c2, %c0_16] : memref<1x18x18x4xf32, #tpu.memory_space<vmem>>, vector<1x16x16x4xf32>
    %16 = vector.shape_cast %15 : vector<1x16x16x4xf32> to vector<16x16x4xf32>
    %17 = vector.shape_cast %16 : vector<16x16x4xf32> to vector<256x4xf32>
    %c2_17 = arith.constant 2 : index
    %c0_18 = arith.constant 0 : index
    %c0_19 = arith.constant 0 : index
    %18 = vector.load %arg3[%c2_17, %c0_18, %c0_19] : memref<9x4x8xf32, #tpu.memory_space<vmem>>, vector<1x4x8xf32>
    %19 = vector.shape_cast %18 : vector<1x4x8xf32> to vector<4x8xf32>
    %cst_20 = arith.constant dense<0.000000e+00> : vector<256x8xf32>
    %20 = tpu.matmul %17, %19, %cst_20 {dimension_numbers = #tpu.dot_dimension_numbers<[1], [0], [0], [1], [0, 0, 1, 1], [], []>} : vector<256x4xf32>, vector<4x8xf32>, vector<256x8xf32> -> vector<256x8xf32>
    %21 = arith.addf %14, %20 : vector<256x8xf32>
    %c0_21 = arith.constant 0 : index
    %c1_22 = arith.constant 1 : index
    %c0_23 = arith.constant 0 : index
    %c0_24 = arith.constant 0 : index
    %22 = vector.load %arg2[%c0_21, %c1_22, %c0_23, %c0_24] : memref<1x18x18x4xf32, #tpu.memory_space<vmem>>, vector<1x16x16x4xf32>
    %23 = vector.shape_cast %22 : vector<1x16x16x4xf32> to vector<16x16x4xf32>
    %24 = vector.shape_cast %23 : vector<16x16x4xf32> to vector<256x4xf32>
    %c3 = arith.constant 3 : index
    %c0_25 = arith.constant 0 : index
    %c0_26 = arith.constant 0 : index
    %25 = vector.load %arg3[%c3, %c0_25, %c0_26] : memref<9x4x8xf32, #tpu.memory_space<vmem>>, vector<1x4x8xf32>
    %26 = vector.shape_cast %25 : vector<1x4x8xf32> to vector<4x8xf32>
    %cst_27 = arith.constant dense<0.000000e+00> : vector<256x8xf32>
    %27 = tpu.matmul %24, %26, %cst_27 {dimension_numbers = #tpu.dot_dimension_numbers<[1], [0], [0], [1], [0, 0, 1, 1], [], []>} : vector<256x4xf32>, vector<4x8xf32>, vector<256x8xf32> -> vector<256x8xf32>
    %28 = arith.addf %21, %27 : vector<256x8xf32>
    %c0_28 = arith.constant 0 : index
    %c1_29 = arith.constant 1 : index
    %c1_30 = arith.constant 1 : index
    %c0_31 = arith.constant 0 : index
    %29 = vector.load %arg2[%c0_28, %c1_29, %c1_30, %c0_31] : memref<1x18x18x4xf32, #tpu.memory_space<vmem>>, vector<1x16x16x4xf32>
    %30 = vector.shape_cast %29 : vector<1x16x16x4xf32> to vector<16x16x4xf32>
    %31 = vector.shape_cast %30 : vector<16x16x4xf32> to vector<256x4xf32>
    %c4 = arith.constant 4 : index
    %c0_32 = arith.constant 0 : index
    %c0_33 = arith.constant 0 : index
    %32 = vector.load %arg3[%c4, %c0_32, %c0_33] : memref<9x4x8xf32, #tpu.memory_space<vmem>>, vector<1x4x8xf32>
    %33 = vector.shape_cast %32 : vector<1x4x8xf32> to vector<4x8xf32>
    %cst_34 = arith.constant dense<0.000000e+00> : vector<256x8xf32>
    %34 = tpu.matmul %31, %33, %cst_34 {dimension_numbers = #tpu.dot_dimension_numbers<[1], [0], [0], [1], [0, 0, 1, 1], [], []>} : vector<256x4xf32>, vector<4x8xf32>, vector<256x8xf32> -> vector<256x8xf32>
    %35 = arith.addf %28, %34 : vector<256x8xf32>
    %c0_35 = arith.constant 0 : index
    %c1_36 = arith.constant 1 : index
    %c2_37 = arith.constant 2 : index
    %c0_38 = arith.constant 0 : index
    %36 = vector.load %arg2[%c0_35, %c1_36, %c2_37, %c0_38] : memref<1x18x18x4xf32, #tpu.memory_space<vmem>>, vector<1x16x16x4xf32>
    %37 = vector.shape_cast %36 : vector<1x16x16x4xf32> to vector<16x16x4xf32>
    %38 = vector.shape_cast %37 : vector<16x16x4xf32> to vector<256x4xf32>
    %c5 = arith.constant 5 : index
    %c0_39 = arith.constant 0 : index
    %c0_40 = arith.constant 0 : index
    %39 = vector.load %arg3[%c5, %c0_39, %c0_40] : memref<9x4x8xf32, #tpu.memory_space<vmem>>, vector<1x4x8xf32>
    %40 = vector.shape_cast %39 : vector<1x4x8xf32> to vector<4x8xf32>
    %cst_41 = arith.constant dense<0.000000e+00> : vector<256x8xf32>
    %41 = tpu.matmul %38, %40, %cst_41 {dimension_numbers = #tpu.dot_dimension_numbers<[1], [0], [0], [1], [0, 0, 1, 1], [], []>} : vector<256x4xf32>, vector<4x8xf32>, vector<256x8xf32> -> vector<256x8xf32>
    %42 = arith.addf %35, %41 : vector<256x8xf32>
    %c0_42 = arith.constant 0 : index
    %c2_43 = arith.constant 2 : index
    %c0_44 = arith.constant 0 : index
    %c0_45 = arith.constant 0 : index
    %43 = vector.load %arg2[%c0_42, %c2_43, %c0_44, %c0_45] : memref<1x18x18x4xf32, #tpu.memory_space<vmem>>, vector<1x16x16x4xf32>
    %44 = vector.shape_cast %43 : vector<1x16x16x4xf32> to vector<16x16x4xf32>
    %45 = vector.shape_cast %44 : vector<16x16x4xf32> to vector<256x4xf32>
    %c6 = arith.constant 6 : index
    %c0_46 = arith.constant 0 : index
    %c0_47 = arith.constant 0 : index
    %46 = vector.load %arg3[%c6, %c0_46, %c0_47] : memref<9x4x8xf32, #tpu.memory_space<vmem>>, vector<1x4x8xf32>
    %47 = vector.shape_cast %46 : vector<1x4x8xf32> to vector<4x8xf32>
    %cst_48 = arith.constant dense<0.000000e+00> : vector<256x8xf32>
    %48 = tpu.matmul %45, %47, %cst_48 {dimension_numbers = #tpu.dot_dimension_numbers<[1], [0], [0], [1], [0, 0, 1, 1], [], []>} : vector<256x4xf32>, vector<4x8xf32>, vector<256x8xf32> -> vector<256x8xf32>
    %49 = arith.addf %42, %48 : vector<256x8xf32>
    %c0_49 = arith.constant 0 : index
    %c2_50 = arith.constant 2 : index
    %c1_51 = arith.constant 1 : index
    %c0_52 = arith.constant 0 : index
    %50 = vector.load %arg2[%c0_49, %c2_50, %c1_51, %c0_52] : memref<1x18x18x4xf32, #tpu.memory_space<vmem>>, vector<1x16x16x4xf32>
    %51 = vector.shape_cast %50 : vector<1x16x16x4xf32> to vector<16x16x4xf32>
    %52 = vector.shape_cast %51 : vector<16x16x4xf32> to vector<256x4xf32>
    %c7 = arith.constant 7 : index
    %c0_53 = arith.constant 0 : index
    %c0_54 = arith.constant 0 : index
    %53 = vector.load %arg3[%c7, %c0_53, %c0_54] : memref<9x4x8xf32, #tpu.memory_space<vmem>>, vector<1x4x8xf32>
    %54 = vector.shape_cast %53 : vector<1x4x8xf32> to vector<4x8xf32>
    %cst_55 = arith.constant dense<0.000000e+00> : vector<256x8xf32>
    %55 = tpu.matmul %52, %54, %cst_55 {dimension_numbers = #tpu.dot_dimension_numbers<[1], [0], [0], [1], [0, 0, 1, 1], [], []>} : vector<256x4xf32>, vector<4x8xf32>, vector<256x8xf32> -> vector<256x8xf32>
    %56 = arith.addf %49, %55 : vector<256x8xf32>
    %c0_56 = arith.constant 0 : index
    %c2_57 = arith.constant 2 : index
    %c2_58 = arith.constant 2 : index
    %c0_59 = arith.constant 0 : index
    %57 = vector.load %arg2[%c0_56, %c2_57, %c2_58, %c0_59] : memref<1x18x18x4xf32, #tpu.memory_space<vmem>>, vector<1x16x16x4xf32>
    %58 = vector.shape_cast %57 : vector<1x16x16x4xf32> to vector<16x16x4xf32>
    %59 = vector.shape_cast %58 : vector<16x16x4xf32> to vector<256x4xf32>
    %c8 = arith.constant 8 : index
    %c0_60 = arith.constant 0 : index
    %c0_61 = arith.constant 0 : index
    %60 = vector.load %arg3[%c8, %c0_60, %c0_61] : memref<9x4x8xf32, #tpu.memory_space<vmem>>, vector<1x4x8xf32>
    %61 = vector.shape_cast %60 : vector<1x4x8xf32> to vector<4x8xf32>
    %cst_62 = arith.constant dense<0.000000e+00> : vector<256x8xf32>
    %62 = tpu.matmul %59, %61, %cst_62 {dimension_numbers = #tpu.dot_dimension_numbers<[1], [0], [0], [1], [0, 0, 1, 1], [], []>} : vector<256x4xf32>, vector<4x8xf32>, vector<256x8xf32> -> vector<256x8xf32>
    %63 = arith.addf %56, %62 : vector<256x8xf32>
    %cst_63 = arith.constant 0.000000e+00 : f32
    %64 = vector.broadcast %cst_63 : f32 to vector<256x8xf32>
    %65 = arith.cmpf ogt, %63, %64 : vector<256x8xf32>
    %cst_64 = arith.constant 1.000000e-01 : f32
    %66 = vector.broadcast %cst_64 : f32 to vector<256x8xf32>
    %67 = arith.mulf %66, %63 : vector<256x8xf32>
    %68 = arith.select %65, %63, %67 : vector<256x8xi1>, vector<256x8xf32>
    %c0_65 = arith.constant 0 : index
    %c0_66 = arith.constant 0 : index
    %c0_67 = arith.constant 0 : index
    %69 = vector.load %arg4[%c0_65, %c0_66, %c0_67] : memref<1x256x8xf32, #tpu.memory_space<vmem>>, vector<1x256x8xf32>
    %70 = vector.shape_cast %69 : vector<1x256x8xf32> to vector<256x8xf32>
    %71 = vector.shape_cast %68 : vector<256x8xf32> to vector<1x256x8xf32>
    tpu.vector_store %arg4[%c0_65, %c0_66, %c0_67], %71 {strides = array<i32>} : memref<1x256x8xf32, #tpu.memory_space<vmem>>, vector<1x256x8xf32>,
    %cst_68 = arith.constant dense<0.000000e+00> : vector<8xf32>
    %72 = vector.multi_reduction <add>, %68, %cst_68 [0] : vector<256x8xf32> to vector<8xf32>
    %73 = vector.shape_cast %72 : vector<8xf32> to vector<1x8xf32>
    %74 = arith.mulf %68, %68 : vector<256x8xf32>
    %cst_69 = arith.constant dense<0.000000e+00> : vector<8xf32>
    %75 = vector.multi_reduction <add>, %74, %cst_69 [0] : vector<256x8xf32> to vector<8xf32>
    %76 = vector.shape_cast %75 : vector<8xf32> to vector<1x8xf32>
    %77 = tpu.iota {dimensions = array<i32: 0>} : vector<2x1xi32>
    %c0_i32 = arith.constant 0 : i32
    %78 = vector.broadcast %c0_i32 : i32 to vector<2x1xi32>
    %79 = arith.cmpi eq, %77, %78 : vector<2x1xi32>
    %80 = vector.shape_cast %79 : vector<2x1xi1> to vector<2x1xi1>
    %81 = vector.broadcast %80 : vector<2x1xi1> to vector<2x8xi1>
    %82 = vector.shape_cast %73 : vector<1x8xf32> to vector<1x8xf32>
    %83 = vector.broadcast %82 : vector<1x8xf32> to vector<2x8xf32>
    %84 = vector.shape_cast %76 : vector<1x8xf32> to vector<1x8xf32>
    %85 = vector.broadcast %84 : vector<1x8xf32> to vector<2x8xf32>
    %86 = arith.select %81, %83, %85 : vector<2x8xi1>, vector<2x8xf32>
    %c0_70 = arith.constant 0 : index
    %c0_71 = arith.constant 0 : index
    %c0_72 = arith.constant 0 : index
    %87 = vector.load %arg5[%c0_70, %c0_71, %c0_72] : memref<1x2x8xf32, #tpu.memory_space<vmem>>, vector<1x2x8xf32>
    %88 = vector.shape_cast %87 : vector<1x2x8xf32> to vector<2x8xf32>
    %89 = vector.shape_cast %86 : vector<2x8xf32> to vector<1x2x8xf32>
    tpu.vector_store %arg5[%c0_70, %c0_71, %c0_72], %89 {strides = array<i32>} : memref<1x2x8xf32, #tpu.memory_space<vmem>>, vector<1x2x8xf32>,
    return
  }
  func.func @transform_0(%arg0: i32, %arg1: i32) -> (i32, i32, i32, i32) {
    %c0_i32 = arith.constant 0 : i32
    %c0_i32_0 = arith.constant 0 : i32
    %c0_i32_1 = arith.constant 0 : i32
    %c0_i32_2 = arith.constant 0 : i32
    return %arg0, %c0_i32, %c0_i32_0, %c0_i32_1 : i32, i32, i32, i32
  }
  func.func @transform_1(%arg0: i32, %arg1: i32) -> (i32, i32, i32) {
    %c0_i32 = arith.constant 0 : i32
    %c0_i32_0 = arith.constant 0 : i32
    %c0_i32_1 = arith.constant 0 : i32
    return %c0_i32, %c0_i32_0, %arg1 : i32, i32, i32
  }
  func.func @transform_2(%arg0: i32, %arg1: i32) -> (i32, i32, i32) {
    %c0_i32 = arith.constant 0 : i32
    %c0_i32_0 = arith.constant 0 : i32
    return %arg0, %c0_i32, %arg1 : i32, i32, i32
  }
  func.func @transform_3(%arg0: i32, %arg1: i32) -> (i32, i32, i32) {
    %c0_i32 = arith.constant 0 : i32
    %c0_i32_0 = arith.constant 0 : i32
    return %arg0, %c0_i32, %arg1 : i32, i32, i32
  }
}

</mosaic_0001>

<bundles_post_ra>
// kernel: tpu_custom_call.1
= control target key start
LH: loop header
LB: loop body
LE: loop exit
PB: predicated region body
PF: predicated region fallthrough
CT: control target
= control target key end

     0   :  { %9 = vsyncpa [#allocation3], 0  ;;  %s7002_s0 = inlined_call_operand.vmem [shape: f32[2,18,18,4], index: 0, kind: input, shape index: {}]   ;;  %s7003_s1 = inlined_call_operand.vmem [shape: f32[9,4,8], index: 1, kind: input, shape index: {}]   ;;  %s7004_s2 = inlined_call_operand.vmem [shape: f32[2,256,8], index: 2, kind: output, shape index: {0}]   ;;  %s7005_s3 = inlined_call_operand.hbm [shape: f32[2,2,8], index: 3, kind: output, shape index: {1}]  }
   0x1   :  { %11 = vsyncpa [#allocation3 + $0x1], 0  ;;  %s5796_s12 = smov 0   ;;  %s5798_s13 = smov 0  }
   0x2   :  { %s5800_s14 = smov 0   ;;  %s5802_s15 = smov 0  }
   0x3   :  { %s5804_s16 = smov 0   ;;  %s5806_s17 = smov 0  }
   0x4 LB: > { %s4122_s18 = sadd.s32 4294967295, %s5773_s17   ;;  %s4123_s19 = sadd.s32 4294967294, %s5773_s17   ;;  %s5773_s17 = sphi %s5806_s17, %s17_s17   ;;  %s5769_s16 = sphi %s5804_s16, %s7121_s16   ;;  %s5765_s15 = sphi %s5802_s15, %s7120_s15   ;;  %s5761_s14 = sphi %s5800_s14, %s7119_s14   ;;  %s5757_s13 = sphi %s5798_s13, %s7118_s13   ;;  %s5753_s12 = sphi %s5796_s12, %s7117_s12  }
   0x5   : > { %s29_s20 = sadd.s32 1, %s5769_s16  ;;  %s118_s21 = sadd.s32 1, %s5761_s14 }
   0x6   : > { %p31_p0 = scmp.ge.s32.totalorder %s29_s20, 2  ;;  %p128_p1 = scmp.ne.s32.totalorder %s5761_s14, %s5757_s13 }
   0x7   : > { %p129_p2 = scmp.eq.s32.totalorder %s4122_s18, 1  ;;  %p134_p3 = scmp.ne.s32.totalorder %s5757_s13, %s5753_s12 }
   0x8   : > { %s7123_s20 = smov (%p31_p0, %s29_s20), 0  ;;  %p135_p5 = scmp.eq.s32.totalorder %s4123_s19, 1 }
   0x9   : > { %p5836_p4 = por %p129_p2, %p128_p1  ;;  %s113_s23 = ssub.s32 %s5769_s16, %s7123_s20 }
   0xa   : > { %p4127_p6 = scmp.ge.s32.totalorder %s5773_s17, 1  ;;  %p116_p7 = scmp.eq.s32.totalorder %s113_s23, 0 }
   0xb   : > { %p5843_p8 = por %p135_p5, %p134_p3  ;;  %p168_p9 = scmp.lt.s32.totalorder %s5773_s17, 3 }
   0xc   : > { %s5849_s25 = scalar_select %p116_p7, %s5761_s14, %s118_s21  }
   0xd   : > { %p169_p10 = pnand %p4127_p6, %p168_p9 }
   0xf   : > { %172 = sbr.rel (%p169_p10) target bundleno = 575 (0x23f), region = 28 }
  0x16   : > { %v4132_v0 = vld [vmem:[%s7003_s1 + $0x4] sm:$0xf]  ;;  %vm385_vm0 = vcmask 1043456   ;;  %v5857_v1 = vld [vmem:[%s7003_s1 + $0x10] sm:$0xf]  ;;  %p204_p11 = scmp.lt.s32.totalorder %s5765_s15, 1 }
  0x17   : > { %4931 = vmatprep.subr.msk.mxu1 %vm385_vm0, %v4132_v0  ;;  %5131 = vmatprep.subr.msk.mxu0 %vm385_vm0, %v5857_v1  ;;  %v253_v2 = vld [vmem:[%s7003_s1] sm:$0xf]  ;;  %v4397_v3 = vld [vmem:[%s7003_s1 + $0x14] sm:$0xf]  ;;  %vm288_vm1 = vcmask 31744   ;;  %vm3766_vm3 = vcmask 64512  }
  0x18   : > { %4932 = vmatpush3.msk.msra.mxu1 %vm385_vm0, %v4132_v0  ;;  %5132 = vmatpush3.msk.msra.mxu0 %vm385_vm0, %v5857_v1  ;;  %s5873_s7 = scalar_select %p204_p11, %s5765_s15, 1  ;;  %v4463_v9 = vld [vmem:[%s7003_s1 + $0x18] sm:$0xf]  ;;  %v5900_v10 = vld [vmem:[%s7003_s1 + $0x8] sm:$0xf] }
  0x19   : > { %4981 = vmatprep.subr.msk.mxu1 %vm385_vm0, %v253_v2  ;;  %5181 = vmatprep.subr.msk.mxu0 %vm385_vm0, %v4397_v3  ;;  %v6019_v28 = vld [vmem:[%s7003_s1 + $0x1c] sm:$0xf]  ;;  %v6182_v61 = vld [vmem:[%s7003_s1 + $0xc] sm:$0xf]  ;;  %s5775_s28 = smov [#allocation2]  }
  0x1a   : > { %s5639_s8 = smul.u32 432, %s5873_s7  ;;  %s4633_s5 = sshll.u32 %s5873_s7, 8 }
  0x1b   : > { %s6808_s9 = scalar_lea.vmem %s7004_s2, %s4633_s5  ;;  %s201_s7 = sand.u32 1, %s5757_s13  }
  0x1c   : > { %s5881_s11 = scalar_lea.vmem %s7002_s0, %s5639_s8  ;;  %s4128_s10 = sshll.u32 %s201_s7, 1 }
  0x1d   : > { %v254_v4 = vld [vmem:[%s5881_s11 + $0x1] sm:$0xff]  ;;  %v4299_v5 = vld [vmem:[%s5881_s11 + $0x19] sm:$0xff]  ;;  %v255_v6 = vld [vmem:[%s5881_s11 + $0x9] sm:$0xff]  ;;  %s203_s18 = scalar_lea.vmem [#allocation2], %s4128_s10  ;;  %s3986_s27 = scalar_lea.sflag [#allocation3], %s201_s7 }
  0x1e   : > { %4933 = vmatprep.mubr.msk.f32.mxu1 %vm288_vm1, %v254_v4  ;;  %5133 = vmatprep.mubr.msk.f32.mxu0 %vm288_vm1, %v4299_v5  ;;  %v4300_v7 = vld [vmem:[%s5881_s11 + $0x21] sm:$0xff]  ;;  %v5890_v8 = vld [vmem:[%s5881_s11 + $0x31] sm:$0xff]  ;;  %v5905_v11 = vld [vmem:[%s5881_s11 + $0x39] sm:$0xff]  ;;  %s4003_s19 = sshll.u32 %s203_s18, 4  ;;  %s5699_s29 = sshll.u32 %s5775_s28, 4  ;;  %s6957_s19 = int_to_ptr.vmem [resolvable:$true] %s4003_s19  ;;  %s5700_s29 = int_to_ptr.vmem [resolvable:$false] %s5699_s29 }
  0x1f   : > { %4934 = vmatmul.mubr.msk.f32.vlgmr.msra.gmra.mrb[0].mxu1 %vm288_vm1, %v255_v6  ;;  %5134 = vmatmul.mubr.msk.f32.vlgmr.msra.gmra.mrb[0].mxu0 %vm288_vm1, %v4300_v7  ;;  %v5911_v12 = vld [vmem:[%s5881_s11 + $0x49] sm:$0xff]  ;;  %v5924_v13 = vld [vmem:[%s5881_s11 + $0x51] sm:$0xff]  ;;  %v5927_v14 = vld [vmem:[%s5881_s11 + $0x61] sm:$0xff]  ;;  %s5701_s30 = scalar_lea.vmem %s5700_s29, 64  ;;  %p5702_p1 = scmp.lt.s32.totalorder %s6957_s19, %s5700_s29 }
  0x20   : > { %4982 = vmatpush3.msk.msra.mxu1 %vm385_vm0, %v253_v2  ;;  %5182 = vmatpush3.msk.msra.mxu0 %vm385_vm0, %v4397_v3  ;;  %v5938_v15 = vld [vmem:[%s5881_s11 + $0x69] sm:$0xff]  ;;  %v5941_v16 = vld [vmem:[%s5881_s11 + $0x79] sm:$0xff]  ;;  %v5952_v17 = vld [vmem:[%s5881_s11 + $0x81] sm:$0xff] }
  0x21   : > { %4936 = vmatprep.mubr.msk.f32.mxu1 %vm288_vm1, %v4299_v5  ;;  %5136 = vmatprep.mubr.msk.f32.mxu0 %vm288_vm1, %v5890_v8  ;;  %v5955_v18 = vld [vmem:[%s5881_s11 + $0x91] sm:$0xff]  ;;  %v5966_v19 = vld [vmem:[%s5881_s11 + $0x99] sm:$0xff]  ;;  %v5969_v20 = vld [vmem:[%s5881_s11 + $0xa9] sm:$0xff] }
  0x22   : > { %5231 = vmatprep.subr.msk.mxu0 %vm385_vm0, %v4463_v9  ;;  %5031 = vmatprep.subr.msk.mxu1 %vm385_vm0, %v5900_v10  ;;  %v5980_v21 = vld [vmem:[%s5881_s11 + $0xb1] sm:$0xff]  ;;  %v5983_v22 = vld [vmem:[%s5881_s11 + $0xc1] sm:$0xff]  ;;  %v5994_v23 = vld [vmem:[%s5881_s11 + $0xc9] sm:$0xff] }
  0x23   : > { %4937 = vmatmul.mubr.msk.f32.gmra.mrb[2].mxu1 %vm288_vm1, %v4300_v7  ;;  %5137 = vmatmul.mubr.msk.f32.gmra.mrb[2].mxu0 %vm288_vm1, %v5905_v11  ;;  %v5997_v24 = vld [vmem:[%s5881_s11 + $0x1a] sm:$0xff]  ;;  %v6008_v25 = vld [vmem:[%s5881_s11 + $0x22] sm:$0xff]  ;;  %v6014_v27 = vld [vmem:[%s5881_s11 + $0x32] sm:$0xff] }
  0x24   : > { %4939 = vmatprep.mubr.msk.f32.mxu1 %vm288_vm1, %v5890_v8  ;;  %5139 = vmatprep.mubr.msk.f32.mxu0 %vm288_vm1, %v5911_v12  ;;  %v6011_v26 = vld [vmem:[%s5881_s11 + $0xd9] sm:$0xff]  ;;  %v6029_v29 = vld [vmem:[%s5881_s11 + $0xe1] sm:$0xff]  ;;  %v6037_v31 = vld [vmem:[%s5881_s11 + $0xf1] sm:$0xff] }
  0x25   : > { %7053 = vst [vmem:[#allocation5_spill] sm:$0xff] %v6029_v29  ;;  %v6032_v30 = vld [vmem:[%s5881_s11 + $0x3a] sm:$0xff]  ;;  %7054 = vst [vmem:[#allocation6_spill] sm:$0xff] %v6037_v31  ;;  %v6040_v32 = vld [vmem:[%s5881_s11 + $0x4a] sm:$0xff] }
  0x26   : > { %v6053_v33 = vld [vmem:[%s5881_s11 + $0xf9] sm:$0xff]  ;;  %v6059_v35 = vld [vmem:[%s5881_s11 + $0x109] sm:$0xff]  ;;  %v6073_v37 = vld [vmem:[%s5881_s11 + $0x111] sm:$0xff] }
  0x27   : > { %4940 = vmatmul.mubr.msk.f32.gmra.mrb[4].mxu1 %vm288_vm1, %v5905_v11  ;;  %5140 = vmatmul.mubr.msk.f32.gmra.mrb[4].mxu0 %vm288_vm1, %v5924_v13  ;;  %7055 = vst [vmem:[#allocation7_spill] sm:$0xff] %v6053_v33  ;;  %v6056_v34 = vld [vmem:[%s5881_s11 + $0x52] sm:$0xff]  ;;  %7056 = vst [vmem:[#allocation8_spill] sm:$0xff] %v6059_v35  ;;  %v6062_v36 = vld [vmem:[%s5881_s11 + $0x62] sm:$0xff] }
  0x28   : > { %4942 = vmatprep.mubr.msk.f32.mxu1 %vm288_vm1, %v5911_v12  ;;  %5142 = vmatprep.mubr.msk.f32.mxu0 %vm288_vm1, %v5927_v14  ;;  %7057 = vst [vmem:[#allocation9_spill] sm:$0xff] %v6073_v37  ;;  %v6076_v38 = vld [vmem:[%s5881_s11 + $0x6a] sm:$0xff]  ;;  %v6079_v39 = vld [vmem:[%s5881_s11 + $0x121] sm:$0xff]  ;;  %v6099_v43 = vld [vmem:[%s5881_s11 + $0x139] sm:$0xff] }
  0x29   : > { %7058 = vst [vmem:[#allocation10_spill] sm:$0xff] %v6079_v39  ;;  %v6082_v40 = vld [vmem:[%s5881_s11 + $0x7a] sm:$0xff]  ;;  %v6093_v41 = vld [vmem:[%s5881_s11 + $0x129] sm:$0xff]  ;;  %7060 = vst [vmem:[#allocation12_spill] sm:$0xff] %v6099_v43 }
  0x2a   : > { %7059 = vst [vmem:[#allocation11_spill] sm:$0xff] %v6093_v41  ;;  %v6096_v42 = vld [vmem:[%s5881_s11 + $0x82] sm:$0xff]  ;;  %v6102_v44 = vld [vmem:[%s5881_s11 + $0x92] sm:$0xff]  ;;  %v6116_v46 = vld [vmem:[%s5881_s11 + $0x9a] sm:$0xff] }
  0x2b   : > { %4943 = vmatmul.mubr.msk.f32.gmra.mrb[6].mxu1 %vm288_vm1, %v5924_v13  ;;  %5143 = vmatmul.mubr.msk.f32.gmra.mrb[6].mxu0 %vm288_vm1, %v5938_v15  ;;  %v6113_v45 = vld [vmem:[%s5881_s11 + $0x141] sm:$0xff]  ;;  %v6119_v47 = vld [vmem:[%s5881_s11 + $0x151] sm:$0xff]  ;;  %v6133_v49 = vld [vmem:[%s5881_s11 + $0x159] sm:$0xff] }
  0x2c   : > { %4945 = vmatprep.mubr.msk.f32.mxu1 %vm288_vm1, %v5927_v14  ;;  %5145 = vmatprep.mubr.msk.f32.mxu0 %vm288_vm1, %v5941_v16  ;;  %7061 = vst [vmem:[#allocation13_spill] sm:$0xff] %v6113_v45  ;;  %7062 = vst [vmem:[#allocation14_spill] sm:$0xff] %v6119_v47  ;;  %v6122_v48 = vld [vmem:[%s5881_s11 + $0xaa] sm:$0xff]  ;;  %v6136_v50 = vld [vmem:[%s5881_s11 + $0xb2] sm:$0xff] }
  0x2d   : > { %7063 = vst [vmem:[#allocation15_spill] sm:$0xff] %v6133_v49  ;;  %v6139_v51 = vld [vmem:[%s5881_s11 + $0x169] sm:$0xff]  ;;  %v6153_v53 = vld [vmem:[%s5881_s11 + $0x171] sm:$0xff]  ;;  %v221_v55 = vld [vmem:[%s5881_s11] sm:$0xff] }
  0x2e   : > { %7064 = vst [vmem:[#allocation16_spill] sm:$0xff] %v6139_v51  ;;  %v6142_v52 = vld [vmem:[%s5881_s11 + $0xc2] sm:$0xff]  ;;  %7065 = vst [vmem:[#allocation17_spill] sm:$0xff] %v6153_v53  ;;  %v6156_v54 = vld [vmem:[%s5881_s11 + $0xca] sm:$0xff] }
  0x2f   : > { %4946 = vmatmul.mubr.msk.f32.gmra.mrb[8].mxu1 %vm288_vm1, %v5938_v15  ;;  %5146 = vmatmul.mubr.msk.f32.gmra.mrb[8].mxu0 %vm288_vm1, %v5952_v17  ;;  %v6160_v56 = vld [vmem:[%s5881_s11 + $0xda] sm:$0xff]  ;;  %v222_v57 = vld [vmem:[%s5881_s11 + $0x8] sm:$0xff]  ;;  %v6177_v60 = vld [vmem:[%s5881_s11 + $0xf2] sm:$0xff] }
  0x30   : > { %4948 = vmatprep.mubr.msk.f32.mxu1 %vm288_vm1, %v5941_v16  ;;  %5148 = vmatprep.mubr.msk.f32.mxu0 %vm288_vm1, %v5955_v18  ;;  %v6171_v58 = vld [vmem:[%s5881_s11 + $0xe2] sm:$0xff]  ;;  %v6174_v59 = vld [vmem:[%s5881_s11 + $0x18] sm:$0xff]  ;;  %v6200_v0 = vld [vmem:[%s5881_s11 + $0x30] sm:$0xff] }
  0x31   : > { %7066 = vst [vmem:[#allocation18_spill] sm:$0xff] %v6174_v59  ;;  %v6192_v62 = vld [vmem:[%s5881_s11 + $0x20] sm:$0xff]  ;;  %7068 = vst [vmem:[#allocation20_spill] sm:$0xff] %v6200_v0  ;;  %v6203_v2 = vld [vmem:[%s5881_s11 + $0x10a] sm:$0xff] }
  0x32   : > { %7067 = vst [vmem:[#allocation19_spill] sm:$0xff] %v6192_v62  ;;  %v6195_v63 = vld [vmem:[%s5881_s11 + $0xfa] sm:$0xff]  ;;  %v6219_v4 = vld [vmem:[%s5881_s11 + $0x112] sm:$0xff]  ;;  %v6222_v5 = vld [vmem:[%s5881_s11 + $0x48] sm:$0xff] }
  0x33   : > { %4949 = vmatmul.mubr.msk.f32.gmra.mrb[10].mxu1 %vm288_vm1, %v5952_v17  ;;  %5149 = vmatmul.mubr.msk.f32.gmra.mrb[10].mxu0 %vm288_vm1, %v5966_v19  ;;  %v6216_v3 = vld [vmem:[%s5881_s11 + $0x38] sm:$0xff]  ;;  %7070 = vst [vmem:[#allocation22_spill] sm:$0xff] %v6222_v5  ;;  %v6225_v6 = vld [vmem:[%s5881_s11 + $0x122] sm:$0xff]  ;;  %v6236_v7 = vld [vmem:[%s5881_s11 + $0x50] sm:$0xff] }
  0x34   : > { %4951 = vmatprep.mubr.msk.f32.mxu1 %vm288_vm1, %v5955_v18  ;;  %5151 = vmatprep.mubr.msk.f32.mxu0 %vm288_vm1, %v5969_v20  ;;  %7069 = vst [vmem:[#allocation21_spill] sm:$0xff] %v6216_v3  ;;  %7071 = vst [vmem:[#allocation23_spill] sm:$0xff] %v6236_v7 }
  0x37   : > { %4952 = vmatmul.mubr.msk.f32.gmra.mrb[12].mxu1 %vm288_vm1, %v5966_v19  ;;  %5152 = vmatmul.mubr.msk.f32.gmra.mrb[12].mxu0 %vm288_vm1, %v5980_v21 }
  0x38   : > { %4954 = vmatprep.mubr.msk.f32.mxu1 %vm288_vm1, %v5969_v20  ;;  %5154 = vmatprep.mubr.msk.f32.mxu0 %vm288_vm1, %v5983_v22 }
  0x3b   : > { %4955 = vmatmul.mubr.msk.f32.gmra.mrb[14].mxu1 %vm288_vm1, %v5980_v21  ;;  %5155 = vmatmul.mubr.msk.f32.gmra.mrb[14].mxu0 %vm288_vm1, %v5994_v23 }
  0x3c   : > { %4957 = vmatprep.mubr.msk.f32.mxu1 %vm288_vm1, %v5983_v22  ;;  %5183 = vmatprep.mubr.msk.f32.mxu0 %vm288_vm1, %v5997_v24 }
  0x3f   : > { %4958 = vmatmul.mubr.msk.f32.gmra.mrb[16].mxu1 %vm288_vm1, %v5994_v23  ;;  %5184 = vmatmul.mubr.msk.f32.vlgmr.msra.gmra.mrb[0].mxu0 %vm288_vm1, %v6008_v25 }
  0x40   : > { %5232 = vmatpush3.msk.msra.mxu0 %vm385_vm0, %v4463_v9  ;;  %4960 = vmatprep.mubr.msk.f32.mxu1 %vm288_vm1, %v6011_v26  ;;  %v6239_v9 = vld [vmem:[%s5881_s11 + $0x12a] sm:$0xff] }
  0x41   : > { %5186 = vmatprep.mubr.msk.f32.mxu0 %vm288_vm1, %v6014_v27  ;;  %5281 = vmatprep.subr.msk.mxu0 %vm385_vm0, %v6019_v28 }
  0x43   : > { %4961 = vmatmul.mubr.msk.f32.gmra.mrb[18].mxu1 %vm288_vm1, %v6029_v29  ;;  %5187 = vmatmul.mubr.msk.f32.gmra.mrb[2].mxu0 %vm288_vm1, %v6032_v30  ;;  %v6336_v29 = vld [vmem:[%s5881_s11 + $0xd8] sm:$0xff] }
  0x44   : > { %4963 = vmatprep.mubr.msk.f32.mxu1 %vm288_vm1, %v6037_v31  ;;  %5189 = vmatprep.mubr.msk.f32.mxu0 %vm288_vm1, %v6040_v32  ;;  %v6319_v31 = vld [vmem:[%s5881_s11 + $0x18a] sm:$0xff] }
  0x45   : > { %7082 = vst [vmem:[#allocation34_spill] sm:$0xff] %v6319_v31 }
  0x47   : > { %4964 = vmatmul.mubr.msk.f32.gmra.mrb[20].mxu1 %vm288_vm1, %v6053_v33  ;;  %5190 = vmatmul.mubr.msk.f32.gmra.mrb[4].mxu0 %vm288_vm1, %v6056_v34  ;;  %v6305_v33 = vld [vmem:[%s5881_s11 + $0x182] sm:$0xff] }
  0x48   : > { %4966 = vmatprep.mubr.msk.f32.mxu1 %vm288_vm1, %v6059_v35  ;;  %5192 = vmatprep.mubr.msk.f32.mxu0 %vm288_vm1, %v6062_v36  ;;  %v6302_v35 = vld [vmem:[%s5881_s11 + $0xa8] sm:$0xff]  ;;  %7080 = vst [vmem:[#allocation32_spill] sm:$0xff] %v6305_v33 }
  0x49   : > { %7079 = vst [vmem:[#allocation31_spill] sm:$0xff] %v6302_v35 }
  0x4b   : > { %4967 = vmatmul.mubr.msk.f32.gmra.mrb[22].mxu1 %vm288_vm1, %v6073_v37  ;;  %5193 = vmatmul.mubr.msk.f32.gmra.mrb[6].mxu0 %vm288_vm1, %v6076_v38  ;;  %v6299_v37 = vld [vmem:[%s5881_s11 + $0x172] sm:$0xff] }
  0x4c   : > { %4969 = vmatprep.mubr.msk.f32.mxu1 %vm288_vm1, %v6079_v39  ;;  %5195 = vmatprep.mubr.msk.f32.mxu0 %vm288_vm1, %v6082_v40  ;;  %v6296_v39 = vld [vmem:[%s5881_s11 + $0x98] sm:$0xff]  ;;  %7078 = vst [vmem:[#allocation30_spill] sm:$0xff] %v6299_v37 }
  0x4d   : > { %7077 = vst [vmem:[#allocation29_spill] sm:$0xff] %v6296_v39 }
  0x4f   : > { %4970 = vmatmul.mubr.msk.f32.gmra.mrb[24].mxu1 %vm288_vm1, %v6093_v41  ;;  %5196 = vmatmul.mubr.msk.f32.gmra.mrb[8].mxu0 %vm288_vm1, %v6096_v42  ;;  %v6285_v41 = vld [vmem:[%s5881_s11 + $0x16a] sm:$0xff] }
  0x50   : > { %4972 = vmatprep.mubr.msk.f32.mxu1 %vm288_vm1, %v6099_v43  ;;  %5198 = vmatprep.mubr.msk.f32.mxu0 %vm288_vm1, %v6102_v44  ;;  %v6282_v43 = vld [vmem:[%s5881_s11 + $0x90] sm:$0xff] }
  0x51   : > { %7076 = vst [vmem:[#allocation28_spill] sm:$0xff] %v6282_v43 }
  0x53   : > { %4973 = vmatmul.mubr.msk.f32.gmra.mrb[26].mxu1 %vm288_vm1, %v6113_v45  ;;  %5199 = vmatmul.mubr.msk.f32.gmra.mrb[10].mxu0 %vm288_vm1, %v6116_v46  ;;  %v6279_v45 = vld [vmem:[%s5881_s11 + $0x15a] sm:$0xff] }
  0x54   : > { %4975 = vmatprep.mubr.msk.f32.mxu1 %vm288_vm1, %v6119_v47  ;;  %5201 = vmatprep.mubr.msk.f32.mxu0 %vm288_vm1, %v6122_v48  ;;  %v6276_v47 = vld [vmem:[%s5881_s11 + $0x80] sm:$0xff] }
  0x55   : > { %7075 = vst [vmem:[#allocation27_spill] sm:$0xff] %v6276_v47 }
  0x57   : > { %4976 = vmatmul.mubr.msk.f32.gmra.mrb[28].mxu1 %vm288_vm1, %v6133_v49  ;;  %5202 = vmatmul.mubr.msk.f32.gmra.mrb[12].mxu0 %vm288_vm1, %v6136_v50  ;;  %v6265_v49 = vld [vmem:[%s5881_s11 + $0x152] sm:$0xff] }
  0x58   : > { %4978 = vmatprep.mubr.msk.f32.mxu1 %vm288_vm1, %v6139_v51  ;;  %5204 = vmatprep.mubr.msk.f32.mxu0 %vm288_vm1, %v6142_v52  ;;  %v6262_v51 = vld [vmem:[%s5881_s11 + $0x78] sm:$0xff] }
  0x59   : > { %7074 = vst [vmem:[#allocation26_spill] sm:$0xff] %v6262_v51 }
  0x5b   : > { %4979 = vmatmul.mubr.msk.f32.gmra.mrb[30].mxu1 %vm288_vm1, %v6153_v53  ;;  %5205 = vmatmul.mubr.msk.f32.gmra.mrb[14].mxu0 %vm288_vm1, %v6156_v54  ;;  %v6259_v53 = vld [vmem:[%s5881_s11 + $0x142] sm:$0xff] }
  0x5c   : > { %4983 = vmatprep.mubr.msk.f32.mxu1 %vm288_vm1, %v221_v55  ;;  %5207 = vmatprep.mubr.msk.f32.mxu0 %vm288_vm1, %v6160_v56  ;;  %v6245_v55 = vld [vmem:[%s5881_s11 + $0x13a] sm:$0xff] }
  0x5f   : > { %4984 = vmatmul.mubr.msk.f32.vlgmr.msra.gmra.mrb[0].mxu1 %vm288_vm1, %v222_v57  ;;  %5208 = vmatmul.mubr.msk.f32.gmra.mrb[16].mxu0 %vm288_vm1, %v6171_v58  ;;  %v6256_v57 = vld [vmem:[%s5881_s11 + $0x68] sm:$0xff] }
  0x60   : > { %5032 = vmatpush3.msk.msra.mxu1 %vm385_vm0, %v5900_v10  ;;  %4986 = vmatprep.mubr.msk.f32.mxu1 %vm288_vm1, %v6174_v59  ;;  %v6242_v10 = vld [vmem:[%s5881_s11 + $0x60] sm:$0xff]  ;;  %7073 = vst [vmem:[#allocation25_spill] sm:$0xff] %v6256_v57 }
  0x61   : > { %5210 = vmatprep.mubr.msk.f32.mxu0 %vm288_vm1, %v6177_v60  ;;  %5081 = vmatprep.subr.msk.mxu1 %vm385_vm0, %v6182_v61  ;;  %7072 = vst [vmem:[#allocation24_spill] sm:$0xff] %v6242_v10  ;;  %v6322_v59 = vld [vmem:[%s5881_s11 + $0xc0] sm:$0xff] }
  0x63   : > { %4987 = vmatmul.mubr.msk.f32.gmra.mrb[2].mxu1 %vm288_vm1, %v6192_v62  ;;  %5211 = vmatmul.mubr.msk.f32.gmra.mrb[18].mxu0 %vm288_vm1, %v6195_v63  ;;  %v6316_v62 = vld [vmem:[%s5881_s11 + $0xb0] sm:$0xff] }
  0x64   : > { %4989 = vmatprep.mubr.msk.f32.mxu1 %vm288_vm1, %v6200_v0  ;;  %5213 = vmatprep.mubr.msk.f32.mxu0 %vm288_vm1, %v6203_v2  ;;  %7081 = vst [vmem:[#allocation33_spill] sm:$0xff] %v6316_v62 }
  0x67   : > { %4990 = vmatmul.mubr.msk.f32.gmra.mrb[4].mxu1 %vm288_vm1, %v6216_v3  ;;  %5214 = vmatmul.mubr.msk.f32.gmra.mrb[20].mxu0 %vm288_vm1, %v6219_v4 }
  0x68   : > { %4992 = vmatprep.mubr.msk.f32.mxu1 %vm288_vm1, %v6222_v5  ;;  %5216 = vmatprep.mubr.msk.f32.mxu0 %vm288_vm1, %v6225_v6 }
  0x6b   : > { %4993 = vmatmul.mubr.msk.f32.gmra.mrb[6].mxu1 %vm288_vm1, %v6236_v7  ;;  %5217 = vmatmul.mubr.msk.f32.gmra.mrb[22].mxu0 %vm288_vm1, %v6239_v9 }
  0x6c   : > { %4995 = vmatprep.mubr.msk.f32.mxu1 %vm288_vm1, %v6242_v10  ;;  %5219 = vmatprep.mubr.msk.f32.mxu0 %vm288_vm1, %v6245_v55 }
  0x6f   : > { %4996 = vmatmul.mubr.msk.f32.gmra.mrb[8].mxu1 %vm288_vm1, %v6256_v57  ;;  %5220 = vmatmul.mubr.msk.f32.gmra.mrb[24].mxu0 %vm288_vm1, %v6259_v53 }
  0x70   : > { %4998 = vmatprep.mubr.msk.f32.mxu1 %vm288_vm1, %v6262_v51  ;;  %5222 = vmatprep.mubr.msk.f32.mxu0 %vm288_vm1, %v6265_v49 }
  0x73   : > { %4999 = vmatmul.mubr.msk.f32.gmra.mrb[10].mxu1 %vm288_vm1, %v6276_v47  ;;  %5223 = vmatmul.mubr.msk.f32.gmra.mrb[26].mxu0 %vm288_vm1, %v6279_v45 }
  0x74   : > { %5001 = vmatprep.mubr.msk.f32.mxu1 %vm288_vm1, %v6282_v43  ;;  %5225 = vmatprep.mubr.msk.f32.mxu0 %vm288_vm1, %v6285_v41 }
  0x77   : > { %5002 = vmatmul.mubr.msk.f32.gmra.mrb[12].mxu1 %vm288_vm1, %v6296_v39  ;;  %5226 = vmatmul.mubr.msk.f32.gmra.mrb[28].mxu0 %vm288_vm1, %v6299_v37  ;;  %v6341_v37 = vld [vmem:[%s7003_s1 + $0x20] sm:$0xf] }
  0x78   : > { %5004 = vmatprep.mubr.msk.f32.mxu1 %vm288_vm1, %v6302_v35  ;;  %5228 = vmatprep.mubr.msk.f32.mxu0 %vm288_vm1, %v6305_v33  ;;  %v6333_v33 = vld [vmem:[%s5881_s11 + $0xc8] sm:$0xff] }
  0x79   : > { %7083 = vst [vmem:[#allocation35_spill] sm:$0xff] %v6333_v33 }
  0x7b   : > { %5005 = vmatmul.mubr.msk.f32.gmra.mrb[14].mxu1 %vm288_vm1, %v6316_v62  ;;  %5229 = vmatmul.mubr.msk.f32.gmra.mrb[30].mxu0 %vm288_vm1, %v6319_v31  ;;  %v6352_v31 = vld [vmem:[%s5881_s11 + $0xe0] sm:$0xff] }
  0x7c   : > { %5007 = vmatprep.mubr.msk.f32.mxu1 %vm288_vm1, %v6322_v59  ;;  %5233 = vmatprep.mubr.msk.f32.mxu0 %vm288_vm1, %v6200_v0  ;;  %v6357_v0 = vld [vmem:[%s5881_s11 + $0xf0] sm:$0xff] }
  0x7f   : > { %5008 = vmatmul.mubr.msk.f32.gmra.mrb[16].mxu1 %vm288_vm1, %v6333_v33  ;;  %5234 = vmatmul.mubr.msk.f32.vlgmr.msra.gmra.mrb[0].mxu0 %vm288_vm1, %v6216_v3  ;;  %v938_v3 = vld [vmem:[%s5881_s11 + $0x2] sm:$0xff] }
  0x80   : > { %5282 = vmatpush3.msk.msra.mxu0 %vm385_vm0, %v6019_v28  ;;  %5010 = vmatprep.mubr.msk.f32.mxu1 %vm288_vm1, %v6336_v29  ;;  %v6370_v28 = vld [vmem:[%s5881_s11 + $0xf8] sm:$0xff] }
  0x81   : > { %5236 = vmatprep.mubr.msk.f32.mxu0 %vm288_vm1, %v6222_v5  ;;  %5331 = vmatprep.subr.msk.mxu0 %vm385_vm0, %v6341_v37  ;;  %v6373_v5 = vld [vmem:[%s5881_s11 + $0x108] sm:$0xff] }
  0x83   : > { %5011 = vmatmul.mubr.msk.f32.gmra.mrb[18].mxu1 %vm288_vm1, %v6352_v31  ;;  %5237 = vmatmul.mubr.msk.f32.gmra.mrb[2].mxu0 %vm288_vm1, %v6236_v7  ;;  %v6384_v7 = vld [vmem:[%s5881_s11 + $0x110] sm:$0xff] }
  0x84   : > { %5013 = vmatprep.mubr.msk.f32.mxu1 %vm288_vm1, %v6357_v0  ;;  %5239 = vmatprep.mubr.msk.f32.mxu0 %vm288_vm1, %v6242_v10  ;;  %v6387_v10 = vld [vmem:[%s5881_s11 + $0x120] sm:$0xff] }
  0x87   : > { %5014 = vmatmul.mubr.msk.f32.gmra.mrb[20].mxu1 %vm288_vm1, %v6370_v28  ;;  %5240 = vmatmul.mubr.msk.f32.gmra.mrb[4].mxu0 %vm288_vm1, %v6256_v57  ;;  %v6398_v57 = vld [vmem:[%s5881_s11 + $0x128] sm:$0xff] }
  0x88   : > { %5016 = vmatprep.mubr.msk.f32.mxu1 %vm288_vm1, %v6373_v5  ;;  %5242 = vmatprep.mubr.msk.f32.mxu0 %vm288_vm1, %v6262_v51  ;;  %v6401_v51 = vld [vmem:[%s5881_s11 + $0x138] sm:$0xff] }
  0x8b   : > { %5017 = vmatmul.mubr.msk.f32.gmra.mrb[22].mxu1 %vm288_vm1, %v6384_v7  ;;  %5243 = vmatmul.mubr.msk.f32.gmra.mrb[6].mxu0 %vm288_vm1, %v6276_v47  ;;  %v6412_v47 = vld [vmem:[%s5881_s11 + $0x140] sm:$0xff] }
  0x8c   : > { %5019 = vmatprep.mubr.msk.f32.mxu1 %vm288_vm1, %v6387_v10  ;;  %5245 = vmatprep.mubr.msk.f32.mxu0 %vm288_vm1, %v6282_v43  ;;  %v6415_v43 = vld [vmem:[%s5881_s11 + $0x150] sm:$0xff] }
  0x8f   : > { %5020 = vmatmul.mubr.msk.f32.gmra.mrb[24].mxu1 %vm288_vm1, %v6398_v57  ;;  %5246 = vmatmul.mubr.msk.f32.gmra.mrb[8].mxu0 %vm288_vm1, %v6296_v39  ;;  %v6426_v39 = vld [vmem:[%s5881_s11 + $0x158] sm:$0xff] }
  0x90   : > { %5022 = vmatprep.mubr.msk.f32.mxu1 %vm288_vm1, %v6401_v51  ;;  %5248 = vmatprep.mubr.msk.f32.mxu0 %vm288_vm1, %v6302_v35  ;;  %v6429_v35 = vld [vmem:[%s5881_s11 + $0x168] sm:$0xff] }
  0x93   : > { %5023 = vmatmul.mubr.msk.f32.gmra.mrb[26].mxu1 %vm288_vm1, %v6412_v47  ;;  %5249 = vmatmul.mubr.msk.f32.gmra.mrb[10].mxu0 %vm288_vm1, %v6316_v62  ;;  %v6440_v62 = vld [vmem:[%s5881_s11 + $0x170] sm:$0xff] }
  0x94   : > { %5025 = vmatprep.mubr.msk.f32.mxu1 %vm288_vm1, %v6415_v43  ;;  %5251 = vmatprep.mubr.msk.f32.mxu0 %vm288_vm1, %v6322_v59 }
  0x97   : > { %5026 = vmatmul.mubr.msk.f32.gmra.mrb[28].mxu1 %vm288_vm1, %v6426_v39  ;;  %5252 = vmatmul.mubr.msk.f32.gmra.mrb[12].mxu0 %vm288_vm1, %v6333_v33  ;;  %v939_v33 = vld [vmem:[%s5881_s11 + $0xa] sm:$0xff] }
  0x98   : > { %5028 = vmatprep.mubr.msk.f32.mxu1 %vm288_vm1, %v6429_v35  ;;  %5254 = vmatprep.mubr.msk.f32.mxu0 %vm288_vm1, %v6336_v29 }
  0x9b   : > { %5029 = vmatmul.mubr.msk.f32.gmra.mrb[30].mxu1 %vm288_vm1, %v6440_v62  ;;  %5255 = vmatmul.mubr.msk.f32.gmra.mrb[14].mxu0 %vm288_vm1, %v6352_v31 }
  0x9c   : > { %5033 = vmatprep.mubr.msk.f32.mxu1 %vm288_vm1, %v938_v3  ;;  %5257 = vmatprep.mubr.msk.f32.mxu0 %vm288_vm1, %v6357_v0  ;;  %v7100_v3 = vld [vmem:[#allocation25_spill] sm:$0xff] }
  0x9f   : > { %5034 = vmatmul.mubr.msk.f32.vlgmr.msra.gmra.mrb[0].mxu1 %vm288_vm1, %v939_v33  ;;  %5258 = vmatmul.mubr.msk.f32.gmra.mrb[16].mxu0 %vm288_vm1, %v6370_v28  ;;  %v4461_v33 = vld [vmem:[%s5881_s11 + $0x198] sm:$0xff] }
  0xa0   : > { %5082 = vmatpush3.msk.msra.mxu1 %vm385_vm0, %v6182_v61  ;;  %5036 = vmatprep.mubr.msk.f32.mxu1 %vm288_vm1, %v5997_v24  ;;  %v6495_v24 = vld [vmem:[%s5881_s11 + $0x180] sm:$0xff] }
  0xa1   : > { %5260 = vmatprep.mubr.msk.f32.mxu0 %vm288_vm1, %v6373_v5  ;;  %5381 = vmatprep.subr.msk.mxu1 %vm385_vm0, %v5857_v1  ;;  %v4462_v61 = vld [vmem:[%s5881_s11 + $0x1a0] sm:$0xff] }
  0xa3   : > { %5037 = vmatmul.mubr.msk.f32.gmra.mrb[2].mxu1 %vm288_vm1, %v6008_v25  ;;  %5261 = vmatmul.mubr.msk.f32.gmra.mrb[18].mxu0 %vm288_vm1, %v6384_v7  ;;  %v6506_v25 = vld [vmem:[%s5881_s11 + $0x188] sm:$0xff] }
  0xa4   : > { %5039 = vmatprep.mubr.msk.f32.mxu1 %vm288_vm1, %v6014_v27  ;;  %5263 = vmatprep.mubr.msk.f32.mxu0 %vm288_vm1, %v6387_v10 }
  0xa7   : > { %5040 = vmatmul.mubr.msk.f32.gmra.mrb[4].mxu1 %vm288_vm1, %v6032_v30  ;;  %5264 = vmatmul.mubr.msk.f32.gmra.mrb[20].mxu0 %vm288_vm1, %v6398_v57 }
  0xa8   : > { %5042 = vmatprep.mubr.msk.f32.mxu1 %vm288_vm1, %v6040_v32  ;;  %5266 = vmatprep.mubr.msk.f32.mxu0 %vm288_vm1, %v6401_v51 }
  0xab   : > { %5043 = vmatmul.mubr.msk.f32.gmra.mrb[6].mxu1 %vm288_vm1, %v6056_v34  ;;  %5267 = vmatmul.mubr.msk.f32.gmra.mrb[22].mxu0 %vm288_vm1, %v6412_v47 }
  0xac   : > { %5045 = vmatprep.mubr.msk.f32.mxu1 %vm288_vm1, %v6062_v36  ;;  %5269 = vmatprep.mubr.msk.f32.mxu0 %vm288_vm1, %v6415_v43 }
  0xaf   : > { %5046 = vmatmul.mubr.msk.f32.gmra.mrb[8].mxu1 %vm288_vm1, %v6076_v38  ;;  %5270 = vmatmul.mubr.msk.f32.gmra.mrb[24].mxu0 %vm288_vm1, %v6426_v39 }
  0xb0   : > { %5048 = vmatprep.mubr.msk.f32.mxu1 %vm288_vm1, %v6082_v40  ;;  %5272 = vmatprep.mubr.msk.f32.mxu0 %vm288_vm1, %v6429_v35 }
  0xb3   : > { %5049 = vmatmul.mubr.msk.f32.gmra.mrb[10].mxu1 %vm288_vm1, %v6096_v42  ;;  %5273 = vmatmul.mubr.msk.f32.gmra.mrb[26].mxu0 %vm288_vm1, %v6440_v62 }
  0xb4   : > { %5051 = vmatprep.mubr.msk.f32.mxu1 %vm288_vm1, %v6102_v44  ;;  %5275 = vmatprep.mubr.msk.f32.mxu0 %vm288_vm1, %v6495_v24 }
  0xb7   : > { %5052 = vmatmul.mubr.msk.f32.gmra.mrb[12].mxu1 %vm288_vm1, %v6116_v46  ;;  %5276 = vmatmul.mubr.msk.f32.gmra.mrb[28].mxu0 %vm288_vm1, %v6506_v25 }
  0xb8   : > { %5054 = vmatprep.mubr.msk.f32.mxu1 %vm288_vm1, %v6122_v48  ;;  %5278 = vmatprep.mubr.msk.f32.mxu0 %vm288_vm1, %v4461_v33  ;;  %v7101_v33 = vld [vmem:[#allocation13_spill] sm:$0xff] }
  0xbb   : > { %5055 = vmatmul.mubr.msk.f32.gmra.mrb[14].mxu1 %vm288_vm1, %v6136_v50  ;;  %5279 = vmatmul.mubr.msk.f32.gmra.mrb[30].mxu0 %vm288_vm1, %v4462_v61  ;;  %v7102_v61 = vld [vmem:[#allocation26_spill] sm:$0xff] }
  0xbc   : > { %5057 = vmatprep.mubr.msk.f32.mxu1 %vm288_vm1, %v6142_v52  ;;  %5283 = vmatprep.mubr.msk.f32.mxu0 %vm288_vm1, %v5890_v8  ;;  %v7084_v8 = vld [vmem:[#allocation30_spill] sm:$0xff] }
  0xbf   : > { %5058 = vmatmul.mubr.msk.f32.gmra.mrb[16].mxu1 %vm288_vm1, %v6156_v54  ;;  %5284 = vmatmul.mubr.msk.f32.vlgmr.msra.gmra.mrb[0].mxu0 %vm288_vm1, %v5905_v11  ;;  %v7085_v11 = vld [vmem:[#allocation5_spill] sm:$0xff] }
  0xc0   : > { %5332 = vmatpush3.msk.msra.mxu0 %vm385_vm0, %v6341_v37  ;;  %5060 = vmatprep.mubr.msk.f32.mxu1 %vm288_vm1, %v6160_v56  ;;  %v7099_v37 = vld [vmem:[#allocation12_spill] sm:$0xff] }
  0xc1   : > { %5286 = vmatprep.mubr.msk.f32.mxu0 %vm288_vm1, %v5911_v12  ;;  %v7086_v12 = vld [vmem:[#allocation18_spill] sm:$0xff] }
  0xc3   : > { %5061 = vmatmul.mubr.msk.f32.gmra.mrb[18].mxu1 %vm288_vm1, %v6171_v58  ;;  %5287 = vmatmul.mubr.msk.f32.gmra.mrb[2].mxu0 %vm288_vm1, %v5924_v13  ;;  %v7087_v13 = vld [vmem:[#allocation6_spill] sm:$0xff] }
  0xc4   : > { %5063 = vmatprep.mubr.msk.f32.mxu1 %vm288_vm1, %v6177_v60  ;;  %5289 = vmatprep.mubr.msk.f32.mxu0 %vm288_vm1, %v5927_v14  ;;  %v7088_v14 = vld [vmem:[#allocation19_spill] sm:$0xff] }
  0xc7   : > { %5064 = vmatmul.mubr.msk.f32.gmra.mrb[20].mxu1 %vm288_vm1, %v6195_v63  ;;  %5290 = vmatmul.mubr.msk.f32.gmra.mrb[4].mxu0 %vm288_vm1, %v5938_v15  ;;  %v7089_v15 = vld [vmem:[#allocation7_spill] sm:$0xff] }
  0xc8   : > { %5066 = vmatprep.mubr.msk.f32.mxu1 %vm288_vm1, %v6203_v2  ;;  %5292 = vmatprep.mubr.msk.f32.mxu0 %vm288_vm1, %v5941_v16  ;;  %v7090_v16 = vld [vmem:[#allocation20_spill] sm:$0xff] }
  0xcb   : > { %5067 = vmatmul.mubr.msk.f32.gmra.mrb[22].mxu1 %vm288_vm1, %v6219_v4  ;;  %5293 = vmatmul.mubr.msk.f32.gmra.mrb[6].mxu0 %vm288_vm1, %v5952_v17  ;;  %v7091_v17 = vld [vmem:[#allocation8_spill] sm:$0xff] }
  0xcc   : > { %5069 = vmatprep.mubr.msk.f32.mxu1 %vm288_vm1, %v6225_v6  ;;  %5295 = vmatprep.mubr.msk.f32.mxu0 %vm288_vm1, %v5955_v18  ;;  %v7092_v18 = vld [vmem:[#allocation21_spill] sm:$0xff] }
  0xcf   : > { %5070 = vmatmul.mubr.msk.f32.gmra.mrb[24].mxu1 %vm288_vm1, %v6239_v9  ;;  %5296 = vmatmul.mubr.msk.f32.gmra.mrb[8].mxu0 %vm288_vm1, %v5966_v19  ;;  %v7093_v19 = vld [vmem:[#allocation9_spill] sm:$0xff] }
  0xd0   : > { %5072 = vmatprep.mubr.msk.f32.mxu1 %vm288_vm1, %v6245_v55  ;;  %5298 = vmatprep.mubr.msk.f32.mxu0 %vm288_vm1, %v5969_v20  ;;  %v7094_v20 = vld [vmem:[#allocation22_spill] sm:$0xff] }
  0xd3   : > { %5073 = vmatmul.mubr.msk.f32.gmra.mrb[26].mxu1 %vm288_vm1, %v6259_v53  ;;  %5299 = vmatmul.mubr.msk.f32.gmra.mrb[10].mxu0 %vm288_vm1, %v5980_v21  ;;  %v7095_v21 = vld [vmem:[#allocation10_spill] sm:$0xff] }
  0xd4   : > { %5075 = vmatprep.mubr.msk.f32.mxu1 %vm288_vm1, %v6265_v49  ;;  %5301 = vmatprep.mubr.msk.f32.mxu0 %vm288_vm1, %v5983_v22  ;;  %v7097_v22 = vld [vmem:[#allocation11_spill] sm:$0xff] }
  0xd7   : > { %5076 = vmatmul.mubr.msk.f32.gmra.mrb[28].mxu1 %vm288_vm1, %v6279_v45  ;;  %5302 = vmatmul.mubr.msk.f32.gmra.mrb[12].mxu0 %vm288_vm1, %v5994_v23  ;;  %v7098_v23 = vld [vmem:[#allocation24_spill] sm:$0xff] }
  0xd8   : > { %5078 = vmatprep.mubr.msk.f32.mxu1 %vm288_vm1, %v6285_v41  ;;  %5304 = vmatprep.mubr.msk.f32.mxu0 %vm288_vm1, %v6011_v26 }
  0xdb   : > { %5079 = vmatmul.mubr.msk.f32.gmra.mrb[30].mxu1 %vm288_vm1, %v7084_v8  ;;  %5305 = vmatmul.mubr.msk.f32.gmra.mrb[14].mxu0 %vm288_vm1, %v7085_v11  ;;  %v7111_v8 = vld [vmem:[#allocation33_spill] sm:$0xff] }
  0xdc   : > { %5083 = vmatprep.mubr.msk.f32.mxu1 %vm288_vm1, %v7086_v12  ;;  %5307 = vmatprep.mubr.msk.f32.mxu0 %vm288_vm1, %v7087_v13  ;;  %v7103_v12 = vld [vmem:[#allocation14_spill] sm:$0xff] }
  0xdf   : > { %5084 = vmatmul.mubr.msk.f32.vlgmr.msra.gmra.mrb[0].mxu1 %vm288_vm1, %v7088_v14  ;;  %5308 = vmatmul.mubr.msk.f32.gmra.mrb[16].mxu0 %vm288_vm1, %v7089_v15  ;;  %v7104_v14 = vld [vmem:[#allocation27_spill] sm:$0xff] }
  0xe0   : > { %5382 = vmatpush3.msk.msra.mxu1 %vm385_vm0, %v5857_v1  ;;  %5086 = vmatprep.mubr.msk.f32.mxu1 %vm288_vm1, %v7090_v16  ;;  %v7096_v1 = vld [vmem:[#allocation23_spill] sm:$0xff] }
  0xe1   : > { %5310 = vmatprep.mubr.msk.f32.mxu0 %vm288_vm1, %v7091_v17  ;;  %v7105_v16 = vld [vmem:[#allocation15_spill] sm:$0xff] }
  0xe3   : > { %5087 = vmatmul.mubr.msk.f32.gmra.mrb[2].mxu1 %vm288_vm1, %v7092_v18  ;;  %5311 = vmatmul.mubr.msk.f32.gmra.mrb[18].mxu0 %vm288_vm1, %v7093_v19  ;;  %v7106_v18 = vld [vmem:[#allocation28_spill] sm:$0xff] }
  0xe4   : > { %5089 = vmatprep.mubr.msk.f32.mxu1 %vm288_vm1, %v7094_v20  ;;  %5313 = vmatprep.mubr.msk.f32.mxu0 %vm288_vm1, %v7095_v21  ;;  %v7107_v20 = vld [vmem:[#allocation16_spill] sm:$0xff] }
  0xe7   : > { %5090 = vmatmul.mubr.msk.f32.gmra.mrb[4].mxu1 %vm288_vm1, %v7096_v1  ;;  %5314 = vmatmul.mubr.msk.f32.gmra.mrb[20].mxu0 %vm288_vm1, %v7097_v22  ;;  %v6633_v1 = vld [vmem:[%s5881_s11 + $0x181] sm:$0xff] }
  0xe8   : > { %5092 = vmatprep.mubr.msk.f32.mxu1 %vm288_vm1, %v7098_v23  ;;  %5316 = vmatprep.mubr.msk.f32.mxu0 %vm288_vm1, %v7099_v37  ;;  %v7108_v23 = vld [vmem:[#allocation29_spill] sm:$0xff] }
  0xeb   : > { %5093 = vmatmul.mubr.msk.f32.gmra.mrb[6].mxu1 %vm288_vm1, %v7100_v3  ;;  %5317 = vmatmul.mubr.msk.f32.gmra.mrb[22].mxu0 %vm288_vm1, %v7101_v33  ;;  %v7109_v3 = vld [vmem:[#allocation17_spill] sm:$0xff] }
  0xec   : > { %5095 = vmatprep.mubr.msk.f32.mxu1 %vm288_vm1, %v7102_v61  ;;  %5319 = vmatprep.mubr.msk.f32.mxu0 %vm288_vm1, %v7103_v12  ;;  %v7110_v61 = vld [vmem:[#allocation31_spill] sm:$0xff] }
  0xef   : > { %5096 = vmatmul.mubr.msk.f32.gmra.mrb[8].mxu1 %vm288_vm1, %v7104_v14  ;;  %5320 = vmatmul.mubr.msk.f32.gmra.mrb[24].mxu0 %vm288_vm1, %v7105_v16  ;;  %v6644_v14 = vld [vmem:[%s5881_s11 + $0x189] sm:$0xff] }
  0xf0   : > { %5098 = vmatprep.mubr.msk.f32.mxu1 %vm288_vm1, %v7106_v18  ;;  %5322 = vmatprep.mubr.msk.f32.mxu0 %vm288_vm1, %v7107_v20  ;;  %v4527_v18 = vld [vmem:[%s5881_s11 + $0x199] sm:$0xff] }
  0xf3   : > { %5099 = vmatmul.mubr.msk.f32.gmra.mrb[10].mxu1 %vm288_vm1, %v7108_v23  ;;  %5323 = vmatmul.mubr.msk.f32.gmra.mrb[26].mxu0 %vm288_vm1, %v7109_v3  ;;  %v4528_v23 = vld [vmem:[%s5881_s11 + $0x1a1] sm:$0xff]  ;;  %v7112_v3 = vld [vmem:[#allocation35_spill] sm:$0xff] }
  0xf4   : > { %5101 = vmatprep.mubr.msk.f32.mxu1 %vm288_vm1, %v7110_v61  ;;  %5325 = vmatprep.mubr.msk.f32.mxu0 %vm288_vm1, %v6633_v1 }
  0xf7   : > { %5102 = vmatmul.mubr.msk.f32.gmra.mrb[12].mxu1 %vm288_vm1, %v7111_v8  ;;  %5326 = vmatmul.mubr.msk.f32.gmra.mrb[28].mxu0 %vm288_vm1, %v6644_v14 }
  0xf8   : > { %5104 = vmatprep.mubr.msk.f32.mxu1 %vm288_vm1, %v6322_v59  ;;  %5328 = vmatprep.mubr.msk.f32.mxu0 %vm288_vm1, %v4527_v18 }
  0xfb   : > { %5105 = vmatmul.mubr.msk.f32.gmra.mrb[14].mxu1 %vm288_vm1, %v7112_v3  ;;  %5329 = vmatmul.mubr.msk.f32.gmra.mrb[30].mxu0 %vm288_vm1, %v4528_v23 }
  0xfc   : > { %5107 = vmatprep.mubr.msk.f32.mxu1 %vm288_vm1, %v6336_v29  ;;  %5333 = vmatprep.mubr.msk.f32.mxu0 %vm288_vm1, %v6014_v27  ;;  %v7114_v27 = vld [vmem:[#allocation32_spill] sm:$0xff] }
  0xfd   : > { %v4593_v29 = vld [vmem:[%s5881_s11 + $0x19a] sm:$0xff] }
  0xff   : > { %5108 = vmatmul.mubr.msk.f32.gmra.mrb[16].mxu1 %vm288_vm1, %v6352_v31  ;;  %5334 = vmatmul.mubr.msk.f32.vlgmr.msra.gmra.mrb[0].mxu0 %vm288_vm1, %v6032_v30  ;;  %v7115_v30 = vld [vmem:[#allocation17_spill] sm:$0xff]  ;;  %v7116_v31 = vld [vmem:[#allocation34_spill] sm:$0xff] }
 0x100   : > { %5110 = vmatprep.mubr.msk.f32.mxu1 %vm288_vm1, %v6357_v0  ;;  %5336 = vmatprep.mubr.msk.f32.mxu0 %vm288_vm1, %v6040_v32  ;;  %v4594_v32 = vld [vmem:[%s5881_s11 + $0x1a2] sm:$0xff]  ;;  %s4630_s11 = sshll.u32 %s5765_s15, 5  ;;  %s5695_s15 = scalar_lea.vmem %s6957_s19, 32 }
 0x101   : > { %s6955_s26 = scalar_lea.hbm %s7005_s3, %s4630_s11  ;;  %p5696_p12 = scmp.ne.s32.totalorder %s6957_s19, %s5695_s15 }
 0x102   : > { %p5703_p2 = scmp.lt.s32.totalorder %s5701_s30, %s5695_s15 }
 0x103   : > { %5111 = vmatmul.mubr.msk.f32.gmra.mrb[18].mxu1 %vm288_vm1, %v6370_v28  ;;  %5337 = vmatmul.mubr.msk.f32.gmra.mrb[2].mxu0 %vm288_vm1, %v6056_v34  ;;  %p5697_p13 = pnand %p5696_p12, %p5836_p4 }
 0x104   : > { %5113 = vmatprep.mubr.msk.f32.mxu1 %vm288_vm1, %v6373_v5  ;;  %5339 = vmatprep.mubr.msk.f32.mxu0 %vm288_vm1, %v6062_v36  ;;  %p5704_p3 = por %p5703_p2, %p5702_p1 }
 0x105   : > { %p5698_p0 = pneg %p5697_p13 }
 0x107   : > { %5114 = vmatmul.mubr.msk.f32.gmra.mrb[20].mxu1 %vm288_vm1, %v6384_v7  ;;  %5340 = vmatmul.mubr.msk.f32.gmra.mrb[4].mxu0 %vm288_vm1, %v6076_v38  ;;  %p5705_p5 = pnand %p5704_p3, %p5698_p0 }
 0x108   : > { %5116 = vmatprep.mubr.msk.f32.mxu1 %vm288_vm1, %v6387_v10  ;;  %5342 = vmatprep.mubr.msk.f32.mxu0 %vm288_vm1, %v6082_v40 }
 0x10b   : > { %5117 = vmatmul.mubr.msk.f32.gmra.mrb[22].mxu1 %vm288_vm1, %v6398_v57  ;;  %5343 = vmatmul.mubr.msk.f32.gmra.mrb[6].mxu0 %vm288_vm1, %v6096_v42 }
 0x10c   : > { %5119 = vmatprep.mubr.msk.f32.mxu1 %vm288_vm1, %v6401_v51  ;;  %5345 = vmatprep.mubr.msk.f32.mxu0 %vm288_vm1, %v6102_v44 }
 0x10f   : > { %5120 = vmatmul.mubr.msk.f32.gmra.mrb[24].mxu1 %vm288_vm1, %v6412_v47  ;;  %5346 = vmatmul.mubr.msk.f32.gmra.mrb[8].mxu0 %vm288_vm1, %v6116_v46 }
 0x110   : > { %5122 = vmatprep.mubr.msk.f32.mxu1 %vm288_vm1, %v6415_v43  ;;  %5348 = vmatprep.mubr.msk.f32.mxu0 %vm288_vm1, %v6122_v48 }
 0x113   : > { %5123 = vmatmul.mubr.msk.f32.gmra.mrb[26].mxu1 %vm288_vm1, %v6426_v39  ;;  %5349 = vmatmul.mubr.msk.f32.gmra.mrb[10].mxu0 %vm288_vm1, %v6136_v50 }
 0x114   : > { %5125 = vmatprep.mubr.msk.f32.mxu1 %vm288_vm1, %v6429_v35  ;;  %5351 = vmatprep.mubr.msk.f32.mxu0 %vm288_vm1, %v6142_v52 }
 0x117   : > { %5126 = vmatmul.mubr.msk.f32.gmra.mrb[28].mxu1 %vm288_vm1, %v6440_v62  ;;  %5352 = vmatmul.mubr.msk.f32.gmra.mrb[12].mxu0 %vm288_vm1, %v6156_v54 }
 0x118   : > { %5128 = vmatprep.mubr.msk.f32.mxu1 %vm288_vm1, %v6495_v24  ;;  %5354 = vmatprep.mubr.msk.f32.mxu0 %vm288_vm1, %v6160_v56 }
 0x11b   : > { %5129 = vmatmul.mubr.msk.f32.gmra.mrb[30].mxu1 %vm288_vm1, %v6506_v25  ;;  %5355 = vmatmul.mubr.msk.f32.gmra.mrb[14].mxu0 %vm288_vm1, %v6171_v58 }
 0x11c   : > { %5157 = vmatprep.mubr.msk.f32.mxu1 %vm288_vm1, %v6011_v26  ;;  %5357 = vmatprep.mubr.msk.f32.mxu0 %vm288_vm1, %v6177_v60  ;;  %v7113_v26 = vld [vmem:[#allocation30_spill] sm:$0xff] }
 0x11f   : > { %5158 = vmatmul.mubr.msk.f32.vlgmr.msra.gmra.mrb[16].mxu1 %vm288_vm1, %v7085_v11  ;;  %5358 = vmatmul.mubr.msk.f32.gmra.mrb[16].mxu0 %vm288_vm1, %v6195_v63 }
 0x120   : > { %5160 = vmatprep.mubr.msk.f32.mxu1 %vm288_vm1, %v7087_v13  ;;  %5360 = vmatprep.mubr.msk.f32.mxu0 %vm288_vm1, %v6203_v2 }
 0x123   : > { %5161 = vmatmul.mubr.msk.f32.gmra.mrb[18].mxu1 %vm288_vm1, %v7089_v15  ;;  %5361 = vmatmul.mubr.msk.f32.gmra.mrb[18].mxu0 %vm288_vm1, %v6219_v4 }
 0x124   : > { %5163 = vmatprep.mubr.msk.f32.mxu1 %vm288_vm1, %v7091_v17  ;;  %5363 = vmatprep.mubr.msk.f32.mxu0 %vm288_vm1, %v6225_v6 }
 0x127   : > { %5164 = vmatmul.mubr.msk.f32.gmra.mrb[20].mxu1 %vm288_vm1, %v7093_v19  ;;  %5364 = vmatmul.mubr.msk.f32.gmra.mrb[20].mxu0 %vm288_vm1, %v6239_v9 }
 0x128   : > { %5166 = vmatprep.mubr.msk.f32.mxu1 %vm288_vm1, %v7095_v21  ;;  %5366 = vmatprep.mubr.msk.f32.mxu0 %vm288_vm1, %v6245_v55 }
 0x12b   : > { %5167 = vmatmul.mubr.msk.f32.gmra.mrb[22].mxu1 %vm288_vm1, %v7097_v22  ;;  %5367 = vmatmul.mubr.msk.f32.gmra.mrb[22].mxu0 %vm288_vm1, %v6259_v53 }
 0x12c   : > { %5169 = vmatprep.mubr.msk.f32.mxu1 %vm288_vm1, %v7099_v37  ;;  %5369 = vmatprep.mubr.msk.f32.mxu0 %vm288_vm1, %v6265_v49 }
 0x12f   : > { %5170 = vmatmul.mubr.msk.f32.gmra.mrb[24].mxu1 %vm288_vm1, %v7101_v33  ;;  %5370 = vmatmul.mubr.msk.f32.gmra.mrb[24].mxu0 %vm288_vm1, %v6279_v45 }
 0x130   : > { %5172 = vmatprep.mubr.msk.f32.mxu1 %vm288_vm1, %v7103_v12  ;;  %5372 = vmatprep.mubr.msk.f32.mxu0 %vm288_vm1, %v6285_v41 }
 0x133   : > { %5173 = vmatmul.mubr.msk.f32.gmra.mrb[26].mxu1 %vm288_vm1, %v7105_v16  ;;  %5373 = vmatmul.mubr.msk.f32.gmra.mrb[26].mxu0 %vm288_vm1, %v7113_v26 }
 0x134   : > { %5175 = vmatprep.mubr.msk.f32.mxu1 %vm288_vm1, %v7107_v20  ;;  %5375 = vmatprep.mubr.msk.f32.mxu0 %vm288_vm1, %v7114_v27 }
 0x137   : > { %5176 = vmatmul.mubr.msk.f32.gmra.mrb[28].mxu1 %vm288_vm1, %v7115_v30  ;;  %5376 = vmatmul.mubr.msk.f32.gmra.mrb[28].mxu0 %vm288_vm1, %v7116_v31 }
 0x138   : > { %5178 = vmatprep.mubr.msk.f32.mxu1 %vm288_vm1, %v6633_v1  ;;  %5378 = vmatprep.mubr.msk.f32.mxu0 %vm288_vm1, %v4593_v29 }
 0x13b   : > { %5179 = vmatmul.mubr.msk.f32.gmra.mrb[30].mxu1 %vm288_vm1, %v6644_v14  ;;  %5379 = vmatmul.mubr.msk.f32.gmra.mrb[30].mxu0 %vm288_vm1, %v4594_v32 }
 0x1b2   : > { %v5085_v34 = vpop.f32.mrb[0].mxu1 }
 0x1b3   : > { %v1528_v35 = vpop.f32.mrb[1].mxu1 }
 0x1b6   : > { %v5088_v36 = vpop.f32.mrb[2].mxu1 }
 0x1b7   : > { %v1538_v38 = vpop.f32.mrb[3].mxu1 }
 0x1ba   : > { %v5091_v39 = vpop.f32.mrb[4].mxu1 }
 0x1bb   : > { %v1548_v40 = vpop.f32.mrb[5].mxu1 }
 0x1be   : > { %v5094_v41 = vpop.f32.mrb[6].mxu1 }
 0x1bf   : > { %v6786_v42 = vpop.f32.mrb[7].mxu1 }
 0x1c2   : > { %v6788_v43 = vpop.f32.mrb[8].mxu1 }
 0x1c3   : > { %v6790_v44 = vpop.f32.mrb[9].mxu1 }
 0x1c6   : > { %v6792_v45 = vpop.f32.mrb[10].mxu1 }
 0x1c7   : > { %v6794_v46 = vpop.f32.mrb[11].mxu1 }
 0x1ca   : > { %v6796_v47 = vpop.f32.mrb[12].mxu1 }
 0x1cb   : > { %v6798_v48 = vpop.f32.mrb[13].mxu1 }
 0x1ce   : > { %v6800_v49 = vpop.f32.mrb[14].mxu1 }
 0x1cf   : > { %v6802_v50 = vpop.f32.mrb[15].mxu1 }
 0x1d2   : > { %v5335_v51 = vpop.f32.mrb[0].mxu0 }
 0x1d3   : > { %v5383_v52 = vadd.f32 %v5335_v51, %v5085_v34  ;;  %v3479_v53 = vpop.f32.mrb[1].mxu0 }
 0x1d4   : > { %v5384_v54 = vadd.f32 %v3479_v53, %v1528_v35 }
 0x1d5   : > { %vm3671_vm2 = vcmp.gt.f32.partialorder %v5383_v52, 0.0  ;;  %v3703_v56 = vmul.f32 0.1, %v5383_v52 }
 0x1d6   : > { %vm3670_vm4 = vcmp.gt.f32.partialorder %v5384_v54, 0.0  ;;  %v3702_v58 = vmul.f32 0.1, %v5384_v54  ;;  %v5338_v59 = vpop.f32.mrb[2].mxu0 }
 0x1d7   : > { %v3735_v60 = vsel %vm3671_vm2, %v5383_v52, %v3703_v56  ;;  %v5385_v62 = vadd.f32 %v5338_v59, %v5088_v36  ;;  %v3489_v63 = vpop.f32.mrb[3].mxu0 }
 0x1d8   : > { %3768 = vst.msk [vmem:[%s6808_s9 + $0x8] sm:$0xff] %vm3766_vm3, %v3735_v60  ;;  %v3800_v0 = vsel %vm3766_vm3, %v3735_v60, 0.0  ;;  %v3869_v2 = vmul.f32 %v3735_v60, %v3735_v60  ;;  %v3734_v4 = vsel %vm3670_vm4, %v5384_v54, %v3702_v58  ;;  %v5386_v5 = vadd.f32 %v3489_v63, %v1538_v38 }
 0x1d9   : > { %3767 = vst.msk [vmem:[%s6808_s9] sm:$0xff] %vm3766_vm3, %v3734_v4  ;;  %v3799_v6 = vsel %vm3766_vm3, %v3734_v4, 0.0  ;;  %v3868_v7 = vmul.f32 %v3734_v4, %v3734_v4  ;;  %vm3673_vm5 = vcmp.gt.f32.partialorder %v5385_v62, 0.0  ;;  %v3705_v9 = vmul.f32 0.1, %v5385_v62 }
 0x1da   : > { %v3901_v10 = vsel %vm3766_vm3, %v3869_v2, 0.0  ;;  %v3801_v55 = vadd.f32 %v3800_v0, %v3799_v6  ;;  %vm3672_vm6 = vcmp.gt.f32.partialorder %v5386_v5, 0.0  ;;  %v3704_v57 = vmul.f32 0.1, %v5386_v5  ;;  %v5341_v28 = vpop.f32.mrb[4].mxu0 }
 0x1db   : > { %v3900_v24 = vsel %vm3766_vm3, %v3868_v7, 0.0  ;;  %v3737_v25 = vsel %vm3673_vm5, %v5385_v62, %v3705_v9  ;;  %v5387_v8 = vadd.f32 %v5341_v28, %v5091_v39  ;;  %v3499_v11 = vpop.f32.mrb[5].mxu0 }
 0x1dc   : > { %v3902_v13 = vadd.f32 %v3901_v10, %v3900_v24  ;;  %3770 = vst.msk [vmem:[%s6808_s9 + $0x18] sm:$0xff] %vm3766_vm3, %v3737_v25  ;;  %v3871_v15 = vmul.f32 %v3737_v25, %v3737_v25  ;;  %v3736_v17 = vsel %vm3672_vm6, %v5386_v5, %v3704_v57  ;;  %v5388_v33 = vadd.f32 %v3499_v11, %v1548_v40 }
 0x1dd   : > { %3769 = vst.msk [vmem:[%s6808_s9 + $0x10] sm:$0xff] %vm3766_vm3, %v3736_v17  ;;  %v3802_v19 = vsel %vm3766_vm3, %v3736_v17, 0.0  ;;  %v3870_v21 = vmul.f32 %v3736_v17, %v3736_v17  ;;  %vm3675_vm7 = vcmp.gt.f32.partialorder %v5387_v8, 0.0  ;;  %v3707_v22 = vmul.f32 0.1, %v5387_v8 }
 0x1de   : > { %v3803_v37 = vadd.f32 %v3802_v19, %v3801_v55  ;;  %v5344_v12 = vpop.f32.mrb[6].mxu0  ;;  %v3804_v61 = vsel %vm3766_vm3, %v3737_v25, 0.0  ;;  %v3905_v14 = vsel %vm3766_vm3, %v3871_v15, 0.0  ;;  %vm3674_vm8 = vcmp.gt.f32.partialorder %v5388_v33, 0.0 }
 0x1df   : > { %v3903_v16 = vsel %vm3766_vm3, %v3870_v21, 0.0  ;;  %v3739_v20 = vsel %vm3675_vm7, %v5387_v8, %v3707_v22  ;;  %v5389_v1 = vadd.f32 %v5344_v12, %v5094_v41  ;;  %v3509_v3 = vpop.f32.mrb[7].mxu0  ;;  %v3706_v23 = vmul.f32 0.1, %v5388_v33 }
 0x1e0   : > { %v3904_v18 = vadd.f32 %v3903_v16, %v3902_v13  ;;  %3772 = vst.msk [vmem:[%s6808_s9 + $0x28] sm:$0xff] %vm3766_vm3, %v3739_v20  ;;  %v3805_v26 = vadd.f32 %v3804_v61, %v3803_v37  ;;  %v5390_v30 = vadd.f32 %v3509_v3, %v6786_v42  ;;  %v3808_v38 = vsel %vm3766_vm3, %v3739_v20, 0.0 }
 0x1e1   : > { %vm3677_vm9 = vcmp.gt.f32.partialorder %v5389_v1, 0.0  ;;  %v3709_v27 = vmul.f32 0.1, %v5389_v1  ;;  %v3738_v32 = vsel %vm3674_vm8, %v5388_v33, %v3706_v23  ;;  %v3873_v39 = vmul.f32 %v3739_v20, %v3739_v20 }
 0x1e2   : > { %v3906_v29 = vadd.f32 %v3905_v14, %v3904_v18  ;;  %v5347_v31 = vpop.f32.mrb[8].mxu0  ;;  %3771 = vst.msk [vmem:[%s6808_s9 + $0x20] sm:$0xff] %vm3766_vm3, %v3738_v32  ;;  %v3806_v40 = vsel %vm3766_vm3, %v3738_v32, 0.0  ;;  %v3872_v41 = vmul.f32 %v3738_v32, %v3738_v32  ;;  %vm3676_vm10 = vcmp.gt.f32.partialorder %v5390_v30, 0.0 }
 0x1e3   : > { %v3741_v34 = vsel %vm3677_vm9, %v5389_v1, %v3709_v27  ;;  %v5391_v35 = vadd.f32 %v5347_v31, %v6788_v43  ;;  %v3519_v36 = vpop.f32.mrb[9].mxu0  ;;  %v3807_v51 = vadd.f32 %v3806_v40, %v3805_v26  ;;  %v3708_v42 = vmul.f32 0.1, %v5390_v30 }
 0x1e4   : > { %3774 = vst.msk [vmem:[%s6808_s9 + $0x38] sm:$0xff] %vm3766_vm3, %v3741_v34  ;;  %v3907_v52 = vsel %vm3766_vm3, %v3872_v41, 0.0  ;;  %v3875_v53 = vmul.f32 %v3741_v34, %v3741_v34  ;;  %v5392_v54 = vadd.f32 %v3519_v36, %v6790_v44  ;;  %v3909_v0 = vsel %vm3766_vm3, %v3873_v39, 0.0 }
 0x1e5   : > { %vm3679_vm11 = vcmp.gt.f32.partialorder %v5391_v35, 0.0  ;;  %v3711_v43 = vmul.f32 0.1, %v5391_v35  ;;  %v3908_v58 = vadd.f32 %v3907_v52, %v3906_v29  ;;  %v3740_v59 = vsel %vm3676_vm10, %v5390_v30, %v3708_v42 }
 0x1e6   : > { %v5350_v56 = vpop.f32.mrb[10].mxu0  ;;  %v3809_v60 = vadd.f32 %v3808_v38, %v3807_v51  ;;  %3773 = vst.msk [vmem:[%s6808_s9 + $0x30] sm:$0xff] %vm3766_vm3, %v3740_v59  ;;  %v3810_v2 = vsel %vm3766_vm3, %v3740_v59, 0.0  ;;  %v3874_v4 = vmul.f32 %v3740_v59, %v3740_v59  ;;  %v3812_v6 = vsel %vm3766_vm3, %v3741_v34, 0.0 }
 0x1e7   : > { %v5393_v62 = vadd.f32 %v5350_v56, %v6792_v45  ;;  %v3529_v63 = vpop.f32.mrb[11].mxu0  ;;  %v3743_v5 = vsel %vm3679_vm11, %v5391_v35, %v3711_v43  ;;  %v3910_v9 = vadd.f32 %v3909_v0, %v3908_v58  ;;  %vm3678_vm12 = vcmp.gt.f32.partialorder %v5392_v54, 0.0 }
 0x1e8   : > { %v3811_v7 = vadd.f32 %v3810_v2, %v3809_v60  ;;  %3776 = vst.msk [vmem:[%s6808_s9 + $0x48] sm:$0xff] %vm3766_vm3, %v3743_v5  ;;  %v3911_v44 = vsel %vm3766_vm3, %v3874_v4, 0.0  ;;  %v3710_v45 = vmul.f32 0.1, %v5392_v54  ;;  %v3913_v55 = vsel %vm3766_vm3, %v3875_v53, 0.0 }
 0x1e9   : > { %vm3681_vm13 = vcmp.gt.f32.partialorder %v5393_v62, 0.0  ;;  %v3713_v10 = vmul.f32 0.1, %v5393_v62  ;;  %v3912_v57 = vadd.f32 %v3911_v44, %v3910_v9  ;;  %v5394_v24 = vadd.f32 %v3529_v63, %v6794_v46 }
 0x1ea   : > { %v3813_v28 = vadd.f32 %v3812_v6, %v3811_v7  ;;  %v5353_v25 = vpop.f32.mrb[12].mxu0  ;;  %v3877_v8 = vmul.f32 %v3743_v5, %v3743_v5  ;;  %v3742_v11 = vsel %vm3678_vm12, %v5392_v54, %v3710_v45  ;;  %v3816_v19 = vsel %vm3766_vm3, %v3743_v5, 0.0 }
 0x1eb   : > { %v3745_v13 = vsel %vm3681_vm13, %v5393_v62, %v3713_v10  ;;  %v5395_v15 = vadd.f32 %v5353_v25, %v6796_v47  ;;  %v3539_v17 = vpop.f32.mrb[13].mxu0  ;;  %3775 = vst.msk [vmem:[%s6808_s9 + $0x40] sm:$0xff] %vm3766_vm3, %v3742_v11  ;;  %v3814_v21 = vsel %vm3766_vm3, %v3742_v11, 0.0  ;;  %v3876_v22 = vmul.f32 %v3742_v11, %v3742_v11 }
 0x1ec   : > { %v3914_v37 = vadd.f32 %v3913_v55, %v3912_v57  ;;  %3778 = vst.msk [vmem:[%s6808_s9 + $0x58] sm:$0xff] %vm3766_vm3, %v3745_v13  ;;  %v3815_v33 = vadd.f32 %v3814_v21, %v3813_v28  ;;  %v3879_v46 = vmul.f32 %v3745_v13, %v3745_v13  ;;  %vm3680_vm14 = vcmp.gt.f32.partialorder %v5394_v24, 0.0 }
 0x1ed   : > { %v3712_v12 = vmul.f32 0.1, %v5394_v24  ;;  %v3915_v20 = vsel %vm3766_vm3, %v3876_v22, 0.0  ;;  %vm3683_vm15 = vcmp.gt.f32.partialorder %v5395_v15, 0.0  ;;  %v3715_v47 = vmul.f32 0.1, %v5395_v15 }
 0x1ee   : > { %v5356_v16 = vpop.f32.mrb[14].mxu0  ;;  %v5396_v1 = vadd.f32 %v3539_v17, %v6798_v48  ;;  %v3917_v61 = vsel %vm3766_vm3, %v3877_v8, 0.0  ;;  %v3916_v14 = vadd.f32 %v3915_v20, %v3914_v37  ;;  %v3817_v23 = vadd.f32 %v3816_v19, %v3815_v33 }
 0x1ef   : > { %v3549_v3 = vpop.f32.mrb[15].mxu0  ;;  %v3744_v18 = vsel %vm3680_vm14, %v5394_v24, %v3712_v12  ;;  %v3820_v26 = vsel %vm3766_vm3, %v3745_v13, 0.0  ;;  %v3747_v30 = vsel %vm3683_vm15, %v5395_v15, %v3715_v47  ;;  %v3921_v31 = vsel %vm3766_vm3, %v3879_v46, 0.0 }
 0x1f0   : > { %3777 = vst.msk [vmem:[%s6808_s9 + $0x50] sm:$0xff] %vm3766_vm3, %v3744_v18  ;;  %v3818_v27 = vsel %vm3766_vm3, %v3744_v18, 0.0  ;;  %v3878_v29 = vmul.f32 %v3744_v18, %v3744_v18  ;;  %v3918_v34 = vadd.f32 %v3917_v61, %v3916_v14  ;;  %3780 = vst.msk [vmem:[%s6808_s9 + $0x68] sm:$0xff] %vm3766_vm3, %v3747_v30  ;;  %vm3682_vm0 = vcmp.gt.f32.partialorder %v5396_v1, 0.0 }
 0x1f1   : > { %v3819_v32 = vadd.f32 %v3818_v27, %v3817_v23  ;;  %v3714_v38 = vmul.f32 0.1, %v5396_v1  ;;  %v5397_v39 = vadd.f32 %v5356_v16, %v6800_v49  ;;  %v5398_v40 = vadd.f32 %v3549_v3, %v6802_v50 }
 0x1f2   : > { %v5159_v48 = vpop.f32.mrb[16].mxu1  ;;  %v5359_v35 = vpop.f32.mrb[16].mxu0  ;;  %v3919_v36 = vsel %vm3766_vm3, %v3878_v29, 0.0  ;;  %v3881_v52 = vmul.f32 %v3747_v30, %v3747_v30  ;;  %v3824_v6 = vsel %vm3766_vm3, %v3747_v30, 0.0 }
 0x1f3   : > { %v1998_v41 = vpop.f32.mrb[17].mxu1  ;;  %v3559_v51 = vpop.f32.mrb[17].mxu0  ;;  %v3920_v42 = vadd.f32 %v3919_v36, %v3918_v34  ;;  %v3821_v53 = vadd.f32 %v3820_v26, %v3819_v32  ;;  %v5399_v43 = vadd.f32 %v5359_v35, %v5159_v48  ;;  %v3746_v54 = vsel %vm3682_vm0, %v5396_v1, %v3714_v38 }
 0x1f4   : > { %vm3685_vm1 = vcmp.gt.f32.partialorder %v5397_v39, 0.0  ;;  %v3717_v56 = vmul.f32 0.1, %v5397_v39  ;;  %vm3684_vm2 = vcmp.gt.f32.partialorder %v5398_v40, 0.0  ;;  %3779 = vst.msk [vmem:[%s6808_s9 + $0x60] sm:$0xff] %vm3766_vm3, %v3746_v54  ;;  %v3822_v58 = vsel %vm3766_vm3, %v3746_v54, 0.0 }
 0x1f5   : > { %v3880_v59 = vmul.f32 %v3746_v54, %v3746_v54  ;;  %v3922_v60 = vadd.f32 %v3921_v31, %v3920_v42  ;;  %v3716_v49 = vmul.f32 0.1, %v5398_v40  ;;  %v3823_v63 = vadd.f32 %v3822_v58, %v3821_v53 }
 0x1f6   : > { %v5162_v50 = vpop.f32.mrb[18].mxu1  ;;  %v5362_v62 = vpop.f32.mrb[18].mxu0  ;;  %v3749_v0 = vsel %vm3685_vm1, %v5397_v39, %v3717_v56  ;;  %vm3687_vm4 = vcmp.gt.f32.partialorder %v5399_v43, 0.0  ;;  %v3719_v2 = vmul.f32 0.1, %v5399_v43  ;;  %v3925_v28 = vsel %vm3766_vm3, %v3881_v52, 0.0 }
 0x1f7   : > { %v2008_v4 = vpop.f32.mrb[19].mxu1  ;;  %v3569_v5 = vpop.f32.mrb[19].mxu0  ;;  %v3923_v7 = vsel %vm3766_vm3, %v3880_v59, 0.0  ;;  %3782 = vst.msk [vmem:[%s6808_s9 + $0x78] sm:$0xff] %vm3766_vm3, %v3749_v0  ;;  %v3883_v9 = vmul.f32 %v3749_v0, %v3749_v0  ;;  %v3748_v44 = vsel %vm3684_vm2, %v5398_v40, %v3716_v49  ;;  %v3825_v10 = vadd.f32 %v3824_v6, %v3823_v63 }
 0x1f8   : > { %v3924_v45 = vadd.f32 %v3923_v7, %v3922_v60  ;;  %3781 = vst.msk [vmem:[%s6808_s9 + $0x70] sm:$0xff] %vm3766_vm3, %v3748_v44  ;;  %v3826_v55 = vsel %vm3766_vm3, %v3748_v44, 0.0  ;;  %v3882_v57 = vmul.f32 %v3748_v44, %v3748_v44  ;;  %v3751_v24 = vsel %vm3687_vm4, %v5399_v43, %v3719_v2 }
 0x1f9   : > { %v5400_v25 = vadd.f32 %v3559_v51, %v1998_v41  ;;  %v5401_v8 = vadd.f32 %v5362_v62, %v5162_v50  ;;  %v3828_v15 = vsel %vm3766_vm3, %v3749_v0, 0.0  ;;  %v3827_v17 = vadd.f32 %v3826_v55, %v3825_v10  ;;  %3784 = vst.msk [vmem:[%s6808_s9 + $0x88] sm:$0xff] %vm3766_vm3, %v3751_v24 }
 0x1fa   : > { %v5165_v11 = vpop.f32.mrb[20].mxu1  ;;  %v5365_v13 = vpop.f32.mrb[20].mxu0  ;;  %v3926_v19 = vadd.f32 %v3925_v28, %v3924_v45  ;;  %v3927_v21 = vsel %vm3766_vm3, %v3882_v57, 0.0  ;;  %v3929_v33 = vsel %vm3766_vm3, %v3883_v9, 0.0  ;;  %v5402_v47 = vadd.f32 %v3569_v5, %v2008_v4 }
 0x1fb   : > { %v2018_v22 = vpop.f32.mrb[21].mxu1  ;;  %v3579_v37 = vpop.f32.mrb[21].mxu0  ;;  %vm3686_vm5 = vcmp.gt.f32.partialorder %v5400_v25, 0.0  ;;  %v3718_v46 = vmul.f32 0.1, %v5400_v25  ;;  %vm3689_vm6 = vcmp.gt.f32.partialorder %v5401_v8, 0.0  ;;  %v3829_v16 = vadd.f32 %v3828_v15, %v3827_v17 }
 0x1fc   : > { %v3928_v12 = vadd.f32 %v3927_v21, %v3926_v19  ;;  %v3721_v20 = vmul.f32 0.1, %v5401_v8  ;;  %v3885_v1 = vmul.f32 %v3751_v24, %v3751_v24  ;;  %v5403_v61 = vadd.f32 %v5365_v13, %v5165_v11 }
 0x1fd   : > { %v3750_v3 = vsel %vm3686_vm5, %v5400_v25, %v3718_v46  ;;  %v5404_v14 = vadd.f32 %v3579_v37, %v2018_v22  ;;  %v3832_v34 = vsel %vm3766_vm3, %v3751_v24, 0.0  ;;  %vm3688_vm7 = vcmp.gt.f32.partialorder %v5402_v47, 0.0 }
 0x1fe   : > { %v5168_v18 = vpop.f32.mrb[22].mxu1  ;;  %v5368_v23 = vpop.f32.mrb[22].mxu0  ;;  %3783 = vst.msk [vmem:[%s6808_s9 + $0x80] sm:$0xff] %vm3766_vm3, %v3750_v3  ;;  %v3830_v26 = vsel %vm3766_vm3, %v3750_v3, 0.0  ;;  %v3884_v27 = vmul.f32 %v3750_v3, %v3750_v3  ;;  %v3930_v29 = vadd.f32 %v3929_v33, %v3928_v12  ;;  %v3753_v30 = vsel %vm3689_vm6, %v5401_v8, %v3721_v20 }
 0x1ff   : > { %v2028_v31 = vpop.f32.mrb[23].mxu1  ;;  %v3589_v32 = vpop.f32.mrb[23].mxu0  ;;  %v3831_v48 = vadd.f32 %v3830_v26, %v3829_v16  ;;  %3786 = vst.msk [vmem:[%s6808_s9 + $0x98] sm:$0xff] %vm3766_vm3, %v3753_v30  ;;  %v3887_v35 = vmul.f32 %v3753_v30, %v3753_v30  ;;  %v3720_v38 = vmul.f32 0.1, %v5402_v47  ;;  %vm3691_vm8 = vcmp.gt.f32.partialorder %v5403_v61, 0.0 }
 0x200   : > { %v3931_v36 = vsel %vm3766_vm3, %v3884_v27, 0.0  ;;  %v3723_v39 = vmul.f32 0.1, %v5403_v61  ;;  %v3933_v40 = vsel %vm3766_vm3, %v3885_v1, 0.0  ;;  %vm3690_vm9 = vcmp.gt.f32.partialorder %v5404_v14, 0.0 }
 0x201   : > { %v3932_v41 = vadd.f32 %v3931_v36, %v3930_v29  ;;  %v3833_v51 = vadd.f32 %v3832_v34, %v3831_v48  ;;  %v3752_v53 = vsel %vm3688_vm7, %v5402_v47, %v3720_v38  ;;  %v3722_v54 = vmul.f32 0.1, %v5404_v14 }
 0x202   : > { %v5171_v42 = vpop.f32.mrb[24].mxu1  ;;  %v5371_v52 = vpop.f32.mrb[24].mxu0  ;;  %v3755_v43 = vsel %vm3691_vm8, %v5403_v61, %v3723_v39  ;;  %v5405_v56 = vadd.f32 %v5368_v23, %v5168_v18  ;;  %v3836_v60 = vsel %vm3766_vm3, %v3753_v30, 0.0  ;;  %3785 = vst.msk [vmem:[%s6808_s9 + $0x90] sm:$0xff] %vm3766_vm3, %v3752_v53  ;;  %v3834_v49 = vsel %vm3766_vm3, %v3752_v53, 0.0 }
 0x203   : > { %v2038_v58 = vpop.f32.mrb[25].mxu1  ;;  %v3599_v59 = vpop.f32.mrb[25].mxu0  ;;  %v3886_v50 = vmul.f32 %v3752_v53, %v3752_v53  ;;  %v3934_v62 = vadd.f32 %v3933_v40, %v3932_v41  ;;  %3788 = vst.msk [vmem:[%s6808_s9 + $0xa8] sm:$0xff] %vm3766_vm3, %v3755_v43  ;;  %v3937_v63 = vsel %vm3766_vm3, %v3887_v35, 0.0  ;;  %v3835_v0 = vadd.f32 %v3834_v49, %v3833_v51 }
 0x204   : > { %v3754_v2 = vsel %vm3690_vm9, %v5404_v14, %v3722_v54  ;;  %vm3693_vm10 = vcmp.gt.f32.partialorder %v5405_v56, 0.0  ;;  %v3725_v7 = vmul.f32 0.1, %v5405_v56  ;;  %v3889_v10 = vmul.f32 %v3755_v43, %v3755_v43 }
 0x205   : > { %v3935_v4 = vsel %vm3766_vm3, %v3886_v50, 0.0  ;;  %3787 = vst.msk [vmem:[%s6808_s9 + $0xa0] sm:$0xff] %vm3766_vm3, %v3754_v2  ;;  %v3838_v5 = vsel %vm3766_vm3, %v3754_v2, 0.0  ;;  %v3888_v6 = vmul.f32 %v3754_v2, %v3754_v2  ;;  %v3837_v55 = vadd.f32 %v3836_v60, %v3835_v0 }
 0x206   : > { %v5174_v9 = vpop.f32.mrb[26].mxu1  ;;  %v5374_v44 = vpop.f32.mrb[26].mxu0  ;;  %v3936_v45 = vadd.f32 %v3935_v4, %v3934_v62  ;;  %v5406_v57 = vadd.f32 %v3589_v32, %v2028_v31  ;;  %v3757_v8 = vsel %vm3693_vm10, %v5405_v56, %v3725_v7  ;;  %v5407_v11 = vadd.f32 %v5371_v52, %v5171_v42 }
 0x207   : > { %v2048_v28 = vpop.f32.mrb[27].mxu1  ;;  %v3609_v24 = vpop.f32.mrb[27].mxu0  ;;  %v3939_v25 = vsel %vm3766_vm3, %v3888_v6, 0.0  ;;  %v5408_v13 = vadd.f32 %v3599_v59, %v2038_v58  ;;  %v3840_v15 = vsel %vm3766_vm3, %v3755_v43, 0.0  ;;  %v3839_v17 = vadd.f32 %v3838_v5, %v3837_v55  ;;  %3790 = vst.msk [vmem:[%s6808_s9 + $0xb8] sm:$0xff] %vm3766_vm3, %v3757_v8 }
 0x208   : > { %v3938_v19 = vadd.f32 %v3937_v63, %v3936_v45  ;;  %v3891_v21 = vmul.f32 %v3757_v8, %v3757_v8  ;;  %vm3692_vm11 = vcmp.gt.f32.partialorder %v5406_v57, 0.0  ;;  %v3724_v22 = vmul.f32 0.1, %v5406_v57 }
 0x209   : > { %vm3695_vm12 = vcmp.gt.f32.partialorder %v5407_v11, 0.0  ;;  %v3727_v37 = vmul.f32 0.1, %v5407_v11  ;;  %v3941_v33 = vsel %vm3766_vm3, %v3889_v10, 0.0  ;;  %v3841_v12 = vadd.f32 %v3840_v15, %v3839_v17 }
 0x20a   : > { %v3940_v46 = vadd.f32 %v3939_v25, %v3938_v19  ;;  %vm3694_vm13 = vcmp.gt.f32.partialorder %v5408_v13, 0.0  ;;  %v5177_v16 = vpop.f32.mrb[28].mxu1  ;;  %v5377_v20 = vpop.f32.mrb[28].mxu0  ;;  %v3756_v47 = vsel %vm3692_vm11, %v5406_v57, %v3724_v22  ;;  %v3726_v3 = vmul.f32 0.1, %v5408_v13 }
 0x20b   : > { %v3759_v1 = vsel %vm3695_vm12, %v5407_v11, %v3727_v37  ;;  %v5409_v61 = vadd.f32 %v5374_v44, %v5174_v9  ;;  %v2058_v14 = vpop.f32.mrb[29].mxu1  ;;  %v3619_v18 = vpop.f32.mrb[29].mxu0  ;;  %v3844_v23 = vsel %vm3766_vm3, %v3757_v8, 0.0  ;;  %3789 = vst.msk [vmem:[%s6808_s9 + $0xb0] sm:$0xff] %vm3766_vm3, %v3756_v47  ;;  %v3842_v26 = vsel %vm3766_vm3, %v3756_v47, 0.0 }
 0x20c   : > { %v3890_v27 = vmul.f32 %v3756_v47, %v3756_v47  ;;  %v3942_v29 = vadd.f32 %v3941_v33, %v3940_v46  ;;  %3792 = vst.msk [vmem:[%s6808_s9 + $0xc8] sm:$0xff] %vm3766_vm3, %v3759_v1  ;;  %v3945_v30 = vsel %vm3766_vm3, %v3891_v21, 0.0  ;;  %v3843_v31 = vadd.f32 %v3842_v26, %v3841_v12 }
 0x20d   : > { %v3758_v32 = vsel %vm3694_vm13, %v5408_v13, %v3726_v3  ;;  %vm3697_vm14 = vcmp.gt.f32.partialorder %v5409_v61, 0.0  ;;  %v3729_v39 = vmul.f32 0.1, %v5409_v61  ;;  %v3893_v42 = vmul.f32 %v3759_v1, %v3759_v1 }
 0x20e   : > { %v5180_v34 = vpop.f32.mrb[30].mxu1  ;;  %v5380_v48 = vpop.f32.mrb[30].mxu0  ;;  %v3943_v35 = vsel %vm3766_vm3, %v3890_v27, 0.0  ;;  %3791 = vst.msk [vmem:[%s6808_s9 + $0xc0] sm:$0xff] %vm3766_vm3, %v3758_v32  ;;  %v3846_v36 = vsel %vm3766_vm3, %v3758_v32, 0.0  ;;  %v3892_v38 = vmul.f32 %v3758_v32, %v3758_v32  ;;  %v3845_v52 = vadd.f32 %v3844_v23, %v3843_v31 }
 0x20f   : > { %v2068_v40 = vpop.f32.mrb[31].mxu1  ;;  %v3629_v41 = vpop.f32.mrb[31].mxu0  ;;  %v3944_v51 = vadd.f32 %v3943_v35, %v3942_v29  ;;  %v5410_v53 = vadd.f32 %v3609_v24, %v2048_v28  ;;  %v3761_v54 = vsel %vm3697_vm14, %v5409_v61, %v3729_v39  ;;  %v5411_v56 = vadd.f32 %v5377_v20, %v5177_v16 }
 0x210   : > { %v3947_v43 = vsel %vm3766_vm3, %v3892_v38, 0.0  ;;  %v5412_v58 = vadd.f32 %v3619_v18, %v2058_v14  ;;  %v3848_v59 = vsel %vm3766_vm3, %v3759_v1, 0.0  ;;  %v3847_v60 = vadd.f32 %v3846_v36, %v3845_v52  ;;  %3794 = vst.msk [vmem:[%s6808_s9 + $0xd8] sm:$0xff] %vm3766_vm3, %v3761_v54 }
 0x211   : > { %v3946_v49 = vadd.f32 %v3945_v30, %v3944_v51  ;;  %vm3696_vm15 = vcmp.gt.f32.partialorder %v5410_v53, 0.0  ;;  %v3728_v50 = vmul.f32 0.1, %v5410_v53  ;;  %vm3699_vm0 = vcmp.gt.f32.partialorder %v5411_v56, 0.0 }
 0x212   : > { %v3731_v62 = vmul.f32 0.1, %v5411_v56  ;;  %v3949_v63 = vsel %vm3766_vm3, %v3893_v42, 0.0  ;;  %v3849_v2 = vadd.f32 %v3848_v59, %v3847_v60  ;;  %vm3698_vm1 = vcmp.gt.f32.partialorder %v5412_v58, 0.0 }
 0x213   : > { %v3948_v0 = vadd.f32 %v3947_v43, %v3946_v49  ;;  %v3760_v4 = vsel %vm3696_vm15, %v5410_v53, %v3728_v50  ;;  %v3730_v6 = vmul.f32 0.1, %v5412_v58  ;;  %v5413_v7 = vadd.f32 %v5380_v48, %v5180_v34 }
 0x214   : > { %v3763_v5 = vsel %vm3699_vm0, %v5411_v56, %v3731_v62  ;;  %v3895_v9 = vmul.f32 %v3761_v54, %v3761_v54  ;;  %3793 = vst.msk [vmem:[%s6808_s9 + $0xd0] sm:$0xff] %vm3766_vm3, %v3760_v4  ;;  %v3850_v44 = vsel %vm3766_vm3, %v3760_v4, 0.0  ;;  %v3894_v45 = vmul.f32 %v3760_v4, %v3760_v4 }
 0x215   : > { %v3950_v10 = vadd.f32 %v3949_v63, %v3948_v0  ;;  %3796 = vst.msk [vmem:[%s6808_s9 + $0xe8] sm:$0xff] %vm3766_vm3, %v3763_v5  ;;  %v3852_v55 = vsel %vm3766_vm3, %v3761_v54, 0.0  ;;  %v3851_v57 = vadd.f32 %v3850_v44, %v3849_v2  ;;  %v3762_v28 = vsel %vm3698_vm1, %v5412_v58, %v3730_v6 }
 0x216   : > { %vm3701_vm2 = vcmp.gt.f32.partialorder %v5413_v7, 0.0  ;;  %v3951_v24 = vsel %vm3766_vm3, %v3894_v45, 0.0  ;;  %3795 = vst.msk [vmem:[%s6808_s9 + $0xe0] sm:$0xff] %vm3766_vm3, %v3762_v28  ;;  %v3854_v25 = vsel %vm3766_vm3, %v3762_v28, 0.0  ;;  %v3896_v8 = vmul.f32 %v3762_v28, %v3762_v28 }
 0x217   : > { %v3733_v11 = vmul.f32 0.1, %v5413_v7  ;;  %v3952_v13 = vadd.f32 %v3951_v24, %v3950_v10  ;;  %v3853_v15 = vadd.f32 %v3852_v55, %v3851_v57  ;;  %v5414_v17 = vadd.f32 %v3629_v41, %v2068_v40 }
 0x218   : > { %v3953_v19 = vsel %vm3766_vm3, %v3895_v9, 0.0  ;;  %v3897_v21 = vmul.f32 %v3763_v5, %v3763_v5  ;;  %v3955_v22 = vsel %vm3766_vm3, %v3896_v8, 0.0  ;;  %v3856_v12 = vsel %vm3766_vm3, %v3763_v5, 0.0 }
 0x219   : > { %v3765_v37 = vsel %vm3701_vm2, %v5413_v7, %v3733_v11  ;;  %v3855_v33 = vadd.f32 %v3854_v25, %v3853_v15  ;;  %v3954_v46 = vadd.f32 %v3953_v19, %v3952_v13  ;;  %vm3700_vm4 = vcmp.gt.f32.partialorder %v5414_v17, 0.0 }
 0x21a   : > { %3798 = vst.msk [vmem:[%s6808_s9 + $0xf8] sm:$0xff] %vm3766_vm3, %v3765_v37  ;;  %v3732_v16 = vmul.f32 0.1, %v5414_v17  ;;  %v3957_v1 = vsel %vm3766_vm3, %v3897_v21, 0.0  ;;  %v3899_v61 = vmul.f32 %v3765_v37, %v3765_v37  ;;  %v3860_v27 = vsel %vm3766_vm3, %v3765_v37, 0.0 }
 0x21b   : > { %v3956_v20 = vadd.f32 %v3955_v22, %v3954_v46  ;;  %v3857_v47 = vadd.f32 %v3856_v12, %v3855_v33  ;;  %v3969_v38 = vlaneseq  ;;  %vm3975_vm5 = vcmask 58368  }
 0x21c   : > { %v3764_v3 = vsel %vm3700_vm4, %v5414_v17, %v3732_v16  ;;  %v3961_v32 = vsel %vm3766_vm3, %v3899_v61, 0.0 }
 0x21d   : > { %3797 = vst.msk [vmem:[%s6808_s9 + $0xf0] sm:$0xff] %vm3766_vm3, %v3764_v3  ;;  %v3858_v14 = vsel %vm3766_vm3, %v3764_v3, 0.0  ;;  %v3898_v18 = vmul.f32 %v3764_v3, %v3764_v3  ;;  %v3958_v23 = vadd.f32 %v3957_v1, %v3956_v20  ;;  %v3970_v42 = vshrl.u32 %v3969_v38, 7 }
 0x21e   : > { %v3859_v26 = vadd.f32 %v3858_v14, %v3857_v47 }
 0x21f   : > { %v3959_v29 = vsel %vm3766_vm3, %v3898_v18, 0.0  ;;  %vm3971_vm3 = vcmp.eq.s32.totalorder %v3970_v42, 0 }
 0x220   : > { %v3861_v30 = vadd.f32 %v3860_v27, %v3859_v26  ;;  %v3960_v31 = vadd.f32 %v3959_v29, %v3958_v23 }
 0x222   : > { %v3862_v34 = vrot.slane %v3861_v30, 4  ;;  %v3962_v48 = vadd.f32 %v3961_v32, %v3960_v31 }
 0x224   : > { %v3863_v35 = vadd.f32 %v3862_v34, %v3861_v30  ;;  %v3963_v36 = vrot.slane %v3962_v48, 4 }
 0x226   : > { %v3864_v39 = vrot.slane %v3863_v35, 2  ;;  %v3964_v40 = vadd.f32 %v3963_v36, %v3962_v48 }
 0x228   : > { %v3865_v41 = vadd.f32 %v3864_v39, %v3863_v35  ;;  %v3965_v51 = vrot.slane %v3964_v40, 2 }
 0x22a   : > { %v3866_v52 = vrot.slane %v3865_v41, 1  ;;  %v3966_v53 = vadd.f32 %v3965_v51, %v3964_v40 }
 0x22c   : > { %v3967_v43 = vrot.slane %v3966_v53, 1  ;;  %v3867_v54 = vadd.f32 %v3866_v52, %v3865_v41 }
 0x22e   : > { %v3968_v56 = vadd.f32 %v3967_v43, %v3966_v53 }
 0x230   : > { %v3974_v58 = vsel %vm3971_vm3, %v3867_v54, %v3968_v56 }
 0x231   : > { %3976 = vst.msk [vmem:[%s203_s18] sm:$0x3] %vm3975_vm5, %v3974_v58 }
 0x232   : > { %5708 = shalt.err (!%p5705_p5)
}
 0x233   : > { %s5709_s4 = scalar_lea.hbm %s6955_s26, 32  ;;  %s5713_s8 = scalar_lea.hbm %s7005_s3, 64 }
 0x234   : > { %p5710_p6 = scmp.ne.s32.totalorder %s6955_s26, %s5709_s4  ;;  %p5714_p10 = scmp.lt.u32.totalorder %s6955_s26, %s7005_s3 }
 0x235   : > { %p5715_p11 = scmp.lt.u32.totalorder %s5713_s8, %s5709_s4  ;;  %p5717_p13 = scmp.lt.u32.totalorder %s5709_s4, %s6955_s26 }
 0x236   : > { %p5711_p7 = pnand %p5710_p6, %p5836_p4 }
 0x237   : > { %p5716_p12 = por %p5715_p11, %p5714_p10 }
 0x238   : > { %p5712_p9 = pneg %p5711_p7 }
 0x239   : > { %p5718_p0 = por %p5717_p13, %p5716_p12 }
 0x23b   : > { %p5719_p1 = pnand %p5718_p0, %p5712_p9 }
 0x23d   : > { %5722 = shalt.err (!%p5719_p1)
}
 0x23e   : > { %5640 = dma.vmem_to_hbm [thread:$0]  (%p5836_p4), %s6957_s19, 32, %s6955_s26, %s3986_s27  }
 0x23f PF: > { %p5646_p2 = scmp.ge.s32.totalorder %s5773_s17, 2  ;;  %s4026_s10 = sand.u32 1, %s5753_s12  }
 0x240   : > { %s4027_s11 = scalar_lea.sflag [#allocation3], %s4026_s10 }
 0x241   : > { %p5643_p3 = pnand %p5646_p2, %p5843_p8 }
 0x243   : > { %5748 = dma.done.wait (!%p5643_p3), %s4027_s11, 32  }
 0x244   : > { %5750 = vsyncadd (!%p5643_p3), %s4027_s11, 4294967264  ;;  %s17_s17 = sadd.s32 1, %s5773_s17   ;;  %s7117_s12 = smov %s5757_s13 }
 0x245   : > { %p14_p5 = scmp.ge.s32.totalorder %s17_s17, 4   ;;  %s7118_s13 = smov %s5761_s14 }
 0x246   : > { %s7119_s14 = smov %s5849_s25  ;;  %s7120_s15 = smov %s5769_s16 }
 0x247   : > { %s7121_s16 = smov %s7123_s20  ;;  %16 = sbr.rel (!%p14_p5) target bundleno = 4 (0x4), region = 88 }
 0x24e   :  { %4032 = vsyncpa [#allocation3], 1 }
 0x24f   :  { %4034 = vsyncpa [#allocation3 + $0x1], 1 }

</bundles_post_ra>
